<compile_context>
chip_gen: v5e
topology: v5e:2x2
jax: 0.10.0
libtpu: 0.0.40
codegen_flags: <defaults>
</compile_context>

<pallas_src>
import functools
import math

import jax
import jax.numpy as jnp
import numpy as np
from jax.experimental import pallas as pl
from jax.experimental.pallas import tpu as pltpu


def _layernorm(x, gamma, beta, eps=1e-5):
    mu = jnp.mean(x, axis=-1, keepdims=True)
    var = jnp.mean((x - mu) ** 2, axis=-1, keepdims=True)
    return (x - mu) * jax.lax.rsqrt(var + eps) * gamma + beta


# -----------------------------------------------------------------------------
# Stage 1: fused per-head Q/K/V projections, head-major output.  Runs once per
# token (grid = (N, S//TS), both axes parallel) so the attention kernel never
# redoes the K/V projections per query tile.
# -----------------------------------------------------------------------------
def _qkv_proj_kernel(heads, head_dim,
                     q_ref, k_ref, v_ref, wq_ref, wk_ref, wv_ref,
                     qh_ref, kh_ref, vh_ref):
    f32 = jnp.float32

    def proj(x_ref, w_ref, o_ref):
        x = x_ref[0]                                              # (TS, E)
        p = jnp.dot(x, w_ref[...], preferred_element_type=f32)    # (TS, E)
        ts = x.shape[0]
        o_ref[0] = jnp.transpose(
            p.reshape(ts, heads, head_dim), (1, 0, 2)).astype(o_ref.dtype)

    proj(q_ref, wq_ref, qh_ref)   # 1/sqrt(D) already folded into wq
    proj(k_ref, wk_ref, kh_ref)
    proj(v_ref, wv_ref, vh_ref)


# -----------------------------------------------------------------------------
# Stage 2: attention (scores/softmax/context) + fc_out + residual/LN + FFN +
# residual/LN, tiled over (batch, query rows).  K/V arrive already projected and
# head-major; their block index is constant in t, so they are fetched once per
# batch row.
# -----------------------------------------------------------------------------
def _attn_ffn_kernel(heads, head_dim, has_mask, causal, compute_dtype, *refs):
    if has_mask:
        bias_ref, *refs = refs
    (qres_ref, qh_ref, kh_ref, vh_ref,
     wo_ref, vecs_ref, w1_ref, b1_ref, w2_ref, out_ref) = refs

    f32 = jnp.float32
    cd = jnp.dtype(compute_dtype)

    qh = qh_ref[0]                      # (heads, TQ, D), scale folded in
    kh = kh_ref[0]                      # (heads, S,  D)
    vh = vh_ref[0]                      # (heads, S,  D)
    tq = qh.shape[1]
    s = kh.shape[1]
    e = heads * head_dim

    # Scores for all heads in one batched MXU contraction.
    # NOTE: contraction width == head_dim; on v6e/v7x prefer configs with D>=128.
    energy = jnp.einsum("hqd,hkd->hqk", qh, kh, preferred_element_type=f32)

    if has_mask:
        # Additive 0 / -1e20 bias; broadcasts over heads if the mask has Hb==1.
        energy = energy + bias_ref[0].astype(f32)
    if causal:
        # In-kernel causal mask: no HBM mask stream at all.
        row = (pl.program_id(1) * tq
               + jax.lax.broadcasted_iota(jnp.int32, (1, tq, s), 1))
        col = jax.lax.broadcasted_iota(jnp.int32, (1, tq, s), 2)
        energy = jnp.where(col > row, jnp.float32(-1e20), energy)

    # Numerically stable softmax over keys (f32).
    energy = energy - jnp.max(energy, axis=-1, keepdims=True)
    p = jnp.exp(energy)
    denom = jnp.sum(p, axis=-1, keepdims=True)
    if cd == jnp.dtype(jnp.float32):
        p = p / denom                                  # exact in the f32 path
    else:
        p = p * pl.reciprocal(denom, approx=True)      # EUP slot, frees VALU

    ctx = jnp.einsum("hqk,hkd->hqd", p.astype(cd), vh,
                     preferred_element_type=f32)       # (heads, TQ, D)
    # TODO(synk): avoid this relayout via a head-blocked wo contraction /
    #             pltpu.einshape once validated.
    concat = jnp.transpose(ctx, (1, 0, 2)).reshape(tq, e).astype(cd)

    bo = vecs_ref[0:1, :]
    g1 = vecs_ref[1:2, :]
    be1 = vecs_ref[2:3, :]
    g2 = vecs_ref[3:4, :]
    be2 = vecs_ref[4:5, :]
    b2 = vecs_ref[5:6, :]

    # fc_out (weight pre-transposed in the wrapper).
    attn_out = jnp.dot(concat, wo_ref[...], preferred_element_type=f32) + bo

    # Residual + LayerNorm 1 (dropout == identity in eval mode).
    x = _layernorm(attn_out + qres_ref[0].astype(f32), g1, be1)

    # Feed-forward: Linear -> ReLU -> Linear (weights pre-transposed).
    h1 = jnp.dot(x.astype(cd), w1_ref[...], preferred_element_type=f32) + b1_ref[...]
    h1 = jnp.maximum(h1, 0.0)
    ff = jnp.dot(h1.astype(cd), w2_ref[...], preferred_element_type=f32) + b2

    # Residual + LayerNorm 2.
    out_ref[0] = _layernorm(ff + x, g2, be2).astype(out_ref.dtype)


def _vmem_capacity_bytes(default=64 * 1024 * 1024):
    try:
        cap = getattr(pltpu.get_tpu_info(), "vmem_capacity_bytes", None)
        return int(cap) if cap else int(default)
    except Exception:
        return int(default)


def transformer_block(value, key, query, mask, params, heads,
                      compute_dtype=jnp.bfloat16, q_tile=None, causal=False,
                      out_dtype=jnp.float32):
    N, S, E = query.shape
    D = E // heads
    assert D * heads == E, "embed_size must be divisible by heads"
    H = params["w1"].shape[0]
    assert not (causal and mask is not None), "pass either causal=True or a mask"

    cd = jnp.dtype(compute_dtype)
    act = cd.itemsize
    outb = jnp.dtype(out_dtype).itemsize
    min_mult = 8 if act == 4 else 16        # sublane quantum for streamed blocks

    # Per-generation VMEM budget (v5e/v6e ~128 MiB, v7x ~64 MiB per TensorCore).
    vmem_cap = _vmem_capacity_bytes()
    vmem_limit = min(int(0.75 * vmem_cap), 112 * 1024 * 1024)
    budget = int(0.7 * vmem_limit)

    has_mask = mask is not None

    # ---- mask -> additive bias, de-broadcast (never materialize N copies) ----
    bias = None
    Nb = Hb = 1
    if has_mask:
        m = jnp.asarray(mask)
        while m.ndim < 4:
            m = m[None]
        Nb, Hb = int(m.shape[0]), int(m.shape[1])
        m = jnp.broadcast_to(m, (Nb, Hb, S, S))
        bias = jnp.where(m == 0, jnp.float32(-1e20), jnp.float32(0.0)).astype(cd)

    # ---- tile selection from the per-generation VMEM budget --------------------
    def est_main(tq):
        stream = 2 * (2 * tq * E * act + 2 * S * E * act + tq * E * outb)
        if has_mask:
            stream += 2 * Hb * tq * S * act
        weights = 2 * ((E * E + 2 * E * H) * act + (6 * E + H) * 4)
        live = 2 * heads * tq * S * 4 + 3 * tq * E * 4 + tq * H * 4
        return stream + weights + live

    def est_proj(ts):
        return 2 * (6 * ts * E * act) + 2 * 3 * E * E * act + 3 * ts * E * 4

    def pick_tile(est_fn):
        cands = {S}
        for c in (1024, 512, 256, 128, 64, 32, 16, 8):
            if c < S and S % c == 0 and c % min_mult == 0:
                cands.add(c)
        for c in sorted(cands, reverse=True):
            if est_fn(c) <= budget:
                return c
        return min(cands)

    if q_tile is None:
        TQ = pick_tile(est_main)
    else:
        TQ = q_tile
        assert S % TQ == 0 and (TQ % min_mult == 0 or TQ == S)

    # ---------------- Stage 1: Q/K/V projections (separate pallas_call) ---------
    # All heads share the same (D, D) weight -> block-diagonal kron trick keeps
    # the contraction lane-dense.  1/sqrt(head_dim) folded into the Q weight.
    eye = jnp.eye(heads, dtype=jnp.float32)
    scale = 1.0 / math.sqrt(D)
    wq_big = (jnp.kron(eye, params["wq"].T) * scale).astype(cd)
    wk_big = jnp.kron(eye, params["wk"].T).astype(cd)
    wv_big = jnp.kron(eye, params["wv"].T).astype(cd)

    q_in = query.astype(cd)
    k_in = key.astype(cd)
    v_in = value.astype(cd)

    TS = pick_tile(est_proj)
    xspec = pl.BlockSpec((1, TS, E), lambda n, t: (n, t, 0))
    wspec = pl.BlockSpec((E, E), lambda n, t: (0, 0))
    hspec = pl.BlockSpec((1, heads, TS, D), lambda n, t: (n, 0, t, 0))
    proj_cost = pl.CostEstimate(
        flops=int(6 * N * S * E * E),
        transcendentals=0,
        bytes_accessed=int(6 * N * S * E * act + 3 * E * E * act))

    qh, kh, vh = pl.pallas_call(
        functools.partial(_qkv_proj_kernel, heads, D),
        out_shape=(jax.ShapeDtypeStruct((N, heads, S, D), cd),) * 3,
        grid=(N, S // TS),
        in_specs=[xspec, xspec, xspec, wspec, wspec, wspec],
        out_specs=(hspec, hspec, hspec),
        compiler_params=pltpu.CompilerParams(
            dimension_semantics=("parallel", "parallel"),
            vmem_limit_bytes=vmem_limit),
        cost_estimate=proj_cost,
    )(q_in, k_in, v_in, wq_big, wk_big, wv_big)

    # ---------------- Stage 2: attention + fc_out + LN + FFN + LN ---------------
    wo_t = params["wo"].T.astype(cd)
    w1_t = params["w1"].T.astype(cd)
    w2_t = params["w2"].T.astype(cd)
    # Pack the small per-feature vectors into one (6, E) array (fewer BlockSpecs).
    vecs = jnp.stack([params["bo"], params["g1"], params["be1"],
                      params["g2"], params["be2"], params["b2"]]).astype(jnp.float32)
    b1 = params["b1"].reshape(1, H).astype(jnp.float32)

    grid = (N, S // TQ)
    qres_spec = pl.BlockSpec((1, TQ, E), lambda n, t: (n, t, 0))
    qh_spec = pl.BlockSpec((1, heads, TQ, D), lambda n, t: (n, 0, t, 0))
    kv_spec = pl.BlockSpec((1, heads, S, D), lambda n, t: (n, 0, 0, 0))
    out_spec = pl.BlockSpec((1, TQ, E), lambda n, t: (n, t, 0))

    def const_spec(a):          # all constant operands here are 2-D
        return pl.BlockSpec(a.shape, lambda n, t: (0, 0))

    inputs, in_specs = [], []
    if has_mask:
        inputs.append(bias)
        if Nb == 1:
            in_specs.append(pl.BlockSpec((1, Hb, TQ, S), lambda n, t: (0, 0, t, 0)))
        else:
            in_specs.append(pl.BlockSpec((1, Hb, TQ, S), lambda n, t: (n, 0, t, 0)))

    inputs += [q_in, qh, kh, vh, wo_t, vecs, w1_t, b1, w2_t]
    in_specs += [qres_spec, qh_spec, kv_spec, kv_spec,
                 const_spec(wo_t), const_spec(vecs), const_spec(w1_t),
                 const_spec(b1), const_spec(w2_t)]

    kernel = functools.partial(_attn_ffn_kernel, heads, D, has_mask, causal, cd)

    steps = N * (S // TQ)
    flops = steps * (4 * heads * TQ * S * D + 2 * TQ * E * E + 4 * TQ * E * H)
    trans = steps * (heads * TQ * S + 2 * TQ)
    bytes_accessed = (2 * N * S * E * act          # q residual + qh streams
                      + 2 * N * S * E * act        # kh + vh, once per batch row
                      + N * S * E * outb           # output
                      + (E * E + 2 * E * H) * act + (6 * E + H) * 4)
    if has_mask:
        bytes_accessed += Nb * Hb * S * S * act
    cost = pl.CostEstimate(flops=int(flops), transcendentals=int(trans),
                           bytes_accessed=int(bytes_accessed))

    return pl.pallas_call(
        kernel,
        out_shape=jax.ShapeDtypeStruct((N, S, E), jnp.dtype(out_dtype)),
        grid=grid,
        in_specs=in_specs,
        out_specs=out_spec,
        compiler_params=pltpu.CompilerParams(
            dimension_semantics=("parallel", "parallel"),
            vmem_limit_bytes=vmem_limit),
        cost_estimate=cost,
    )(*inputs)


def transformer_block_ref(value, key, query, mask, params, heads):
    """Pure-JAX f32 reference mirroring the PyTorch forward exactly."""
    N, S, E = query.shape
    D = E // heads
    v = value.reshape(N, S, heads, D) @ params["wv"].T
    k = key.reshape(N, S, heads, D) @ params["wk"].T
    q = query.reshape(N, S, heads, D) @ params["wq"].T
    energy = jnp.einsum("nqhd,nkhd->nhqk", q, k)
    if mask is not None:
        energy = jnp.where(mask == 0, -1e20, energy)
    attn = jax.nn.softmax(energy / math.sqrt(D), axis=3)
    out = jnp.einsum("nhql,nlhd->nqhd", attn, v).reshape(N, S, E)
    out = out @ params["wo"].T + params["bo"]
    x = _layernorm(out + query, params["g1"], params["be1"])
    h1 = jnp.maximum(x @ params["w1"].T + params["b1"], 0.0)
    ff = h1 @ params["w2"].T + params["b2"]
    return _layernorm(ff + x, params["g2"], params["be2"])


if __name__ == "__main__":
    # Small but TPU-friendly shapes: lane-dense E=128, seq tiled into TQ=16 rows.
    N, S, E, heads, fexp = 2, 32, 128, 4, 4
    D = E // heads
    H = fexp * E

    root = jax.random.PRNGKey(0)
    ks = jax.random.split(root, 12)

    value = jax.random.normal(ks[0], (N, S, E), jnp.float32)
    key = jax.random.normal(ks[1], (N, S, E), jnp.float32)
    query = jax.random.normal(ks[2], (N, S, E), jnp.float32)

    params = {
        "wv": jax.random.normal(ks[3], (D, D), jnp.float32) * (1.0 / math.sqrt(D)),
        "wk": jax.random.normal(ks[4], (D, D), jnp.float32) * (1.0 / math.sqrt(D)),
        "wq": jax.random.normal(ks[5], (D, D), jnp.float32) * (1.0 / math.sqrt(D)),
        "wo": jax.random.normal(ks[6], (E, E), jnp.float32) * (1.0 / math.sqrt(E)),
        "bo": jax.random.normal(ks[7], (E,), jnp.float32) * 0.1,
        "g1": jnp.ones((E,), jnp.float32),
        "be1": jnp.zeros((E,), jnp.float32),
        "g2": jnp.ones((E,), jnp.float32),
        "be2": jnp.zeros((E,), jnp.float32),
        "w1": jax.random.normal(ks[8], (H, E), jnp.float32) * (1.0 / math.sqrt(E)),
        "b1": jax.random.normal(ks[9], (H,), jnp.float32) * 0.1,
        "w2": jax.random.normal(ks[10], (E, H), jnp.float32) * (1.0 / math.sqrt(H)),
        "b2": jax.random.normal(ks[11], (E,), jnp.float32) * 0.1,
    }

    causal_mask = jnp.tril(jnp.ones((S, S), jnp.float32)).reshape(1, 1, S, S)

    # Tolerances: the pure-JAX reference matmuls run at TPU default (bf16-pass)
    # MXU precision, so the f32-path comparison is bounded by that, not by the
    # kernel.  1e-2 still catches any structural error (mask/residual/LN/FFN).
    # 1) f32 MXU path, no mask, auto tile (TQ == S).
    out = jax.block_until_ready(
        transformer_block(value, key, query, None, params, heads,
                          compute_dtype=jnp.float32))
    ref = transformer_block_ref(value, key, query, None, params, heads)
    np.testing.assert_allclose(np.asarray(out), np.asarray(ref), atol=1e-2, rtol=1e-2)

    # 2) f32 path, explicit (1,1,S,S) mask streamed de-broadcast, grid=(2,2).
    out_m = jax.block_until_ready(
        transformer_block(value, key, query, causal_mask, params, heads,
                          compute_dtype=jnp.float32, q_tile=16))
    ref_m = transformer_block_ref(value, key, query, causal_mask, params, heads)
    np.testing.assert_allclose(np.asarray(out_m), np.asarray(ref_m), atol=1e-2, rtol=1e-2)

    # 3) bf16 MXU path (default), causal mask generated in-kernel (no HBM mask
    #    stream), seq tiled — looser tolerance from bf16 operand rounding
    #    (accumulation, softmax, LayerNorm and residuals remain f32).
    out_bf = jax.block_until_ready(
        transformer_block(value, key, query, None, params, heads,
                          causal=True, q_tile=16))
    np.testing.assert_allclose(np.asarray(out_bf), np.asarray(ref_m), atol=1e-1, rtol=1e-1)

    print("KERNEL_OK")
</pallas_src>

<mosaic_0001>
module attributes {stable_mosaic.version = 11 : i64} {
  func.func @_qkv_proj_kernel(%arg0: i32, %arg1: i32, %arg2: memref<1x32x128xf32, #tpu.memory_space<vmem>>, %arg3: memref<1x32x128xf32, #tpu.memory_space<vmem>>, %arg4: memref<1x32x128xf32, #tpu.memory_space<vmem>>, %arg5: memref<128x128xf32, #tpu.memory_space<vmem>>, %arg6: memref<128x128xf32, #tpu.memory_space<vmem>>, %arg7: memref<128x128xf32, #tpu.memory_space<vmem>>, %arg8: memref<1x4x32x32xf32, #tpu.memory_space<vmem>>, %arg9: memref<1x4x32x32xf32, #tpu.memory_space<vmem>>, %arg10: memref<1x4x32x32xf32, #tpu.memory_space<vmem>>) attributes {dimension_semantics = [#tpu.dimension_semantics<parallel>, #tpu.dimension_semantics<parallel>], iteration_bounds = array<i64: 2, 1>, scalar_prefetch = 0 : i64, scratch_operands = 0 : i64, tpu.core_type = #tpu.core_type<tc>, window_params = [{transform_indices = @transform_0, window_bounds = array<i64: 1, 32, 128>}, {transform_indices = @transform_1, window_bounds = array<i64: 1, 32, 128>}, {transform_indices = @transform_2, window_bounds = array<i64: 1, 32, 128>}, {pipeline_mode = #tpu.pipeline_mode<synchronous>, transform_indices = @transform_3, window_bounds = array<i64: 128, 128>}, {pipeline_mode = #tpu.pipeline_mode<synchronous>, transform_indices = @transform_4, window_bounds = array<i64: 128, 128>}, {pipeline_mode = #tpu.pipeline_mode<synchronous>, transform_indices = @transform_5, window_bounds = array<i64: 128, 128>}, {transform_indices = @transform_6, window_bounds = array<i64: 1, 4, 32, 32>}, {transform_indices = @transform_7, window_bounds = array<i64: 1, 4, 32, 32>}, {transform_indices = @transform_8, window_bounds = array<i64: 1, 4, 32, 32>}]} {
    %c0 = arith.constant 0 : index
    %c0_0 = arith.constant 0 : index
    %c0_1 = arith.constant 0 : index
    %0 = vector.load %arg2[%c0, %c0_0, %c0_1] : memref<1x32x128xf32, #tpu.memory_space<vmem>>, vector<1x32x128xf32>
    %1 = vector.shape_cast %0 : vector<1x32x128xf32> to vector<32x128xf32>
    %c0_2 = arith.constant 0 : index
    %c0_3 = arith.constant 0 : index
    %2 = vector.load %arg5[%c0_2, %c0_3] : memref<128x128xf32, #tpu.memory_space<vmem>>, vector<128x128xf32>
    %cst = arith.constant dense<0.000000e+00> : vector<32x128xf32>
    %3 = tpu.matmul %1, %2, %cst {dimension_numbers = #tpu.dot_dimension_numbers<[1], [0], [0], [1], [0, 0, 1, 1], [], []>} : vector<32x128xf32>, vector<128x128xf32>, vector<32x128xf32> -> vector<32x128xf32>
    %4 = vector.shape_cast %3 : vector<32x128xf32> to vector<32x4x32xf32>
    %5 = tpu.transpose %4, [1, 0, 2] : vector<32x4x32xf32> -> vector<4x32x32xf32>
    %c0_4 = arith.constant 0 : index
    %c0_5 = arith.constant 0 : index
    %c0_6 = arith.constant 0 : index
    %c0_7 = arith.constant 0 : index
    %6 = vector.load %arg8[%c0_4, %c0_5, %c0_6, %c0_7] : memref<1x4x32x32xf32, #tpu.memory_space<vmem>>, vector<1x4x32x32xf32>
    %7 = vector.shape_cast %6 : vector<1x4x32x32xf32> to vector<4x32x32xf32>
    %8 = vector.shape_cast %5 : vector<4x32x32xf32> to vector<1x4x32x32xf32>
    tpu.vector_store %arg8[%c0_4, %c0_5, %c0_6, %c0_7], %8 {strides = array<i32>} : memref<1x4x32x32xf32, #tpu.memory_space<vmem>>, vector<1x4x32x32xf32>,
    %c0_8 = arith.constant 0 : index
    %c0_9 = arith.constant 0 : index
    %c0_10 = arith.constant 0 : index
    %9 = vector.load %arg3[%c0_8, %c0_9, %c0_10] : memref<1x32x128xf32, #tpu.memory_space<vmem>>, vector<1x32x128xf32>
    %10 = vector.shape_cast %9 : vector<1x32x128xf32> to vector<32x128xf32>
    %c0_11 = arith.constant 0 : index
    %c0_12 = arith.constant 0 : index
    %11 = vector.load %arg6[%c0_11, %c0_12] : memref<128x128xf32, #tpu.memory_space<vmem>>, vector<128x128xf32>
    %cst_13 = arith.constant dense<0.000000e+00> : vector<32x128xf32>
    %12 = tpu.matmul %10, %11, %cst_13 {dimension_numbers = #tpu.dot_dimension_numbers<[1], [0], [0], [1], [0, 0, 1, 1], [], []>} : vector<32x128xf32>, vector<128x128xf32>, vector<32x128xf32> -> vector<32x128xf32>
    %13 = vector.shape_cast %12 : vector<32x128xf32> to vector<32x4x32xf32>
    %14 = tpu.transpose %13, [1, 0, 2] : vector<32x4x32xf32> -> vector<4x32x32xf32>
    %c0_14 = arith.constant 0 : index
    %c0_15 = arith.constant 0 : index
    %c0_16 = arith.constant 0 : index
    %c0_17 = arith.constant 0 : index
    %15 = vector.load %arg9[%c0_14, %c0_15, %c0_16, %c0_17] : memref<1x4x32x32xf32, #tpu.memory_space<vmem>>, vector<1x4x32x32xf32>
    %16 = vector.shape_cast %15 : vector<1x4x32x32xf32> to vector<4x32x32xf32>
    %17 = vector.shape_cast %14 : vector<4x32x32xf32> to vector<1x4x32x32xf32>
    tpu.vector_store %arg9[%c0_14, %c0_15, %c0_16, %c0_17], %17 {strides = array<i32>} : memref<1x4x32x32xf32, #tpu.memory_space<vmem>>, vector<1x4x32x32xf32>,
    %c0_18 = arith.constant 0 : index
    %c0_19 = arith.constant 0 : index
    %c0_20 = arith.constant 0 : index
    %18 = vector.load %arg4[%c0_18, %c0_19, %c0_20] : memref<1x32x128xf32, #tpu.memory_space<vmem>>, vector<1x32x128xf32>
    %19 = vector.shape_cast %18 : vector<1x32x128xf32> to vector<32x128xf32>
    %c0_21 = arith.constant 0 : index
    %c0_22 = arith.constant 0 : index
    %20 = vector.load %arg7[%c0_21, %c0_22] : memref<128x128xf32, #tpu.memory_space<vmem>>, vector<128x128xf32>
    %cst_23 = arith.constant dense<0.000000e+00> : vector<32x128xf32>
    %21 = tpu.matmul %19, %20, %cst_23 {dimension_numbers = #tpu.dot_dimension_numbers<[1], [0], [0], [1], [0, 0, 1, 1], [], []>} : vector<32x128xf32>, vector<128x128xf32>, vector<32x128xf32> -> vector<32x128xf32>
    %22 = vector.shape_cast %21 : vector<32x128xf32> to vector<32x4x32xf32>
    %23 = tpu.transpose %22, [1, 0, 2] : vector<32x4x32xf32> -> vector<4x32x32xf32>
    %c0_24 = arith.constant 0 : index
    %c0_25 = arith.constant 0 : index
    %c0_26 = arith.constant 0 : index
    %c0_27 = arith.constant 0 : index
    %24 = vector.load %arg10[%c0_24, %c0_25, %c0_26, %c0_27] : memref<1x4x32x32xf32, #tpu.memory_space<vmem>>, vector<1x4x32x32xf32>
    %25 = vector.shape_cast %24 : vector<1x4x32x32xf32> to vector<4x32x32xf32>
    %26 = vector.shape_cast %23 : vector<4x32x32xf32> to vector<1x4x32x32xf32>
    tpu.vector_store %arg10[%c0_24, %c0_25, %c0_26, %c0_27], %26 {strides = array<i32>} : memref<1x4x32x32xf32, #tpu.memory_space<vmem>>, vector<1x4x32x32xf32>,
    return
  }
  func.func @transform_0(%arg0: i32, %arg1: i32) -> (i32, i32, i32) {
    %c0_i32 = arith.constant 0 : i32
    %c0_i32_0 = arith.constant 0 : i32
    return %arg0, %arg1, %c0_i32 : i32, i32, i32
  }
  func.func @transform_1(%arg0: i32, %arg1: i32) -> (i32, i32, i32) {
    %c0_i32 = arith.constant 0 : i32
    %c0_i32_0 = arith.constant 0 : i32
    return %arg0, %arg1, %c0_i32 : i32, i32, i32
  }
  func.func @transform_2(%arg0: i32, %arg1: i32) -> (i32, i32, i32) {
    %c0_i32 = arith.constant 0 : i32
    %c0_i32_0 = arith.constant 0 : i32
    return %arg0, %arg1, %c0_i32 : i32, i32, i32
  }
  func.func @transform_3(%arg0: i32, %arg1: i32) -> (i32, i32) {
    %c0_i32 = arith.constant 0 : i32
    %c0_i32_0 = arith.constant 0 : i32
    %c0_i32_1 = arith.constant 0 : i32
    return %c0_i32, %c0_i32_0 : i32, i32
  }
  func.func @transform_4(%arg0: i32, %arg1: i32) -> (i32, i32) {
    %c0_i32 = arith.constant 0 : i32
    %c0_i32_0 = arith.constant 0 : i32
    %c0_i32_1 = arith.constant 0 : i32
    return %c0_i32, %c0_i32_0 : i32, i32
  }
  func.func @transform_5(%arg0: i32, %arg1: i32) -> (i32, i32) {
    %c0_i32 = arith.constant 0 : i32
    %c0_i32_0 = arith.constant 0 : i32
    %c0_i32_1 = arith.constant 0 : i32
    return %c0_i32, %c0_i32_0 : i32, i32
  }
  func.func @transform_6(%arg0: i32, %arg1: i32) -> (i32, i32, i32, i32) {
    %c0_i32 = arith.constant 0 : i32
    %c0_i32_0 = arith.constant 0 : i32
    %c0_i32_1 = arith.constant 0 : i32
    return %arg0, %c0_i32, %arg1, %c0_i32_0 : i32, i32, i32, i32
  }
  func.func @transform_7(%arg0: i32, %arg1: i32) -> (i32, i32, i32, i32) {
    %c0_i32 = arith.constant 0 : i32
    %c0_i32_0 = arith.constant 0 : i32
    %c0_i32_1 = arith.constant 0 : i32
    return %arg0, %c0_i32, %arg1, %c0_i32_0 : i32, i32, i32, i32
  }
  func.func @transform_8(%arg0: i32, %arg1: i32) -> (i32, i32, i32, i32) {
    %c0_i32 = arith.constant 0 : i32
    %c0_i32_0 = arith.constant 0 : i32
    %c0_i32_1 = arith.constant 0 : i32
    return %arg0, %c0_i32, %arg1, %c0_i32_0 : i32, i32, i32, i32
  }
}

</mosaic_0001>

<bundles_post_ra>
// kernel: tpu_custom_call.1
= control target key start
LH: loop header
LB: loop body
LE: loop exit
PB: predicated region body
PF: predicated region fallthrough
CT: control target
= control target key end

     0   :  { %s4221_s0 = inlined_call_operand.hbm [shape: f32[2,32,128], index: 0, kind: input, shape index: {}]   ;;  %s4222_s1 = inlined_call_operand.hbm [shape: f32[2,32,128], index: 1, kind: input, shape index: {}]   ;;  %s4223_s2 = inlined_call_operand.hbm [shape: f32[2,32,128], index: 2, kind: input, shape index: {}]   ;;  %s4224_s3 = inlined_call_operand.hbm [shape: f32[128,128], index: 3, kind: input, shape index: {}]   ;;  %s4225_s4 = inlined_call_operand.hbm [shape: f32[128,128], index: 4, kind: input, shape index: {}]   ;;  %s4226_s5 = inlined_call_operand.hbm [shape: f32[128,128], index: 5, kind: input, shape index: {}]   ;;  %s4227_s6 = inlined_call_operand.hbm [shape: f32[2,4,32,32], index: 6, kind: output, shape index: {0}]   ;;  %s4228_s7 = inlined_call_operand.hbm [shape: f32[2,4,32,32], index: 7, kind: output, shape index: {1}]   ;;  %s4229_s8 = inlined_call_operand.hbm [shape: f32[2,4,32,32], index: 8, kind: output, shape index: {2}]  }
   0x1   :  { %4242 = sst [smem:[#allocation29_spill]] %s4222_s1 }
   0x2   :  { %4243 = sst [smem:[#allocation30_spill]] %s4224_s3 }
   0x3   :  { %4244 = sst [smem:[#allocation31_spill]] %s4225_s4 }
   0x4   :  { %4245 = sst [smem:[#allocation32_spill]] %s4226_s5 }
   0x5   :  { %14 = vsyncpa [#allocation3], 0 }
   0x6   :  { %16 = vsyncpa [#allocation3 + $0x1], 0 }
   0x7   :  { %17 = vsyncpa [#allocation6], 0 }
   0x8   :  { %19 = vsyncpa [#allocation6 + $0x1], 0 }
   0x9   :  { %20 = vsyncpa [#allocation9], 0 }
   0xa   :  { %21 = vsyncpa [#allocation12], 0 }
   0xb   :  { %22 = vsyncpa [#allocation4], 0 }
   0xc   :  { %24 = vsyncpa [#allocation4 + $0x1], 0 }
   0xd   :  { %25 = vsyncpa [#allocation15], 0 }
   0xe   :  { %27 = vsyncpa [#allocation15 + $0x1], 0  ;;  %s3022_s27 = smov 0   ;;  %s3024_s28 = smov 0  }
   0xf   :  { %s3026_s29 = smov 0   ;;  %s3028_s30 = smov 0  }
  0x10   :  { %s3030_s9 = smov 0   ;;  %s3032_s10 = smov 0  }
  0x11 LB: > { %4246 = sst [smem:[#allocation23_spill]] %s2943_s27  ;;  %s3053_s11 = sadd.s32 4294967295, %s2963_s10   ;;  %s2963_s10 = sphi %s3032_s10, %s33_s10   ;;  %s2959_s9 = sphi %s3030_s9, %s4271_s9   ;;  %s2955_s30 = sphi %s3028_s30, %s4270_s30   ;;  %s2951_s29 = sphi %s3026_s29, %s4274_s29   ;;  %s2947_s28 = sphi %s3024_s28, %s4273_s28   ;;  %s2943_s27 = sphi %s3022_s27, %s4272_s27  }
  0x12   : > { %4247 = sst [smem:[#allocation24_spill]] %s2959_s9  ;;  %s4230_s12 = sadd.s32 4294967294, %s2963_s10  }
  0x13   : > { %4248 = sst [smem:[#allocation25_spill]] %s2963_s10  ;;  %p67_p0 = scmp.ne.s32.totalorder %s2947_s28, %s2943_s27 }
  0x14   : > { %p68_p1 = scmp.eq.s32.totalorder %s3053_s11, 0  ;;  %p212_p2 = scmp.eq.s32.totalorder %s3053_s11, 1 }
  0x15   : > { %p218_p3 = scmp.eq.s32.totalorder %s4230_s12, 1  ;;  %p2450_p5 = scmp.ge.s32.totalorder %s2963_s10, 1 }
  0x16   : > { %p3064_p4 = por %p68_p1, %p67_p0  ;;  %p281_p7 = scmp.lt.s32.totalorder %s2963_s10, 3 }
  0x17   : > { %p3069_p6 = por %p218_p3, %p67_p0  ;;  %s4252_s3 = sld [smem:[#allocation30_spill]] }
  0x18   : > { %p3077_p8 = pnand %p2450_p5, %p281_p7  ;;  %s2965_s19 = smov [#allocation8]  }
  0x19   : > { %s4250_s14 = scalar_select %p3069_p6, 1, 0 }
  0x1a   : > { %p2531_p9 = pneg %p3077_p8  ;;  %s294_s20 = sshll.u32 %s2965_s19, 4  ;;  %s295_s20 = int_to_ptr.vmem [resolvable:$true] %s294_s20 }
  0x1b   : > { %4251 = sst [smem:[#allocation26_spill]] %s4250_s14  ;;  %p2454_p11 = scmp.ge.s32.totalorder %s2963_s10, 2 }
  0x1c   : > { %p3085_p10 = pnand %p2531_p9, %p68_p1  ;;  %s4231_s22 = smov 128  }
  0x1d   : > { %s292_s17 = sshll.u32 %s4252_s3, 4  ;;  %s4233_s23 = smov 8   ;;  %s293_s17 = int_to_ptr.hbm [resolvable:$true] %s292_s17 }
  0x1e   : > { %2534 = dma.hbm_to_vmem [thread:$0]  (!%p3085_p10), %s293_s17, 2048, %s295_s20, [#allocation9], %s4231_s22, %s4231_s22, %s4233_s23  }
  0x1f   : > { %s45_s24 = sadd.s32 1, %s2959_s9  ;;  %s54_s25 = sadd.s32 1, %s2951_s29 }
  0x20   : > { %p47_p12 = scmp.ge.s32.totalorder %s45_s24, 2  ;;  %p61_p13 = scmp.ne.s32.totalorder %s2951_s29, %s2947_s28 }
  0x21   : > { %p62_p0 = scmp.eq.s32.totalorder %s2963_s10, 0  ;;  %p2564_p7 = scmp.lt.s32.totalorder %s2963_s10, 2 }
  0x22   : > { %s4276_s24 = smov (%p47_p12, %s45_s24), 0  ;;  %p3104_p5 = por %p212_p2, %p61_p13 }
  0x23   : > { %4255 = sst [smem:[#allocation27_spill]] %s4276_s24  ;;  %p63_p3 = por %p62_p0, %p61_p13 }
  0x24   : > { %s49_s15 = ssub.s32 %s2959_s9, %s4276_s24  ;;  %s4236_s16 = sand.u32 1, %s2951_s29  }
  0x25   : > { %p52_p9 = scmp.eq.s32.totalorder %s49_s15, 0  ;;  %s3114_s17 = sshll.u32 %s4236_s16, 5 }
  0x26   : > { %s3117_s19 = sshll.u32 %s2959_s9, 5  ;;  %p3122_p12 = pnand %p2564_p7, %p63_p3 }
  0x27   : > { %s3120_s20 = scalar_select %p52_p9, %s2951_s29, %s54_s25  }
  0x28   : > { %s360_s22 = sand.u32 1, %s2963_s10   ;;  %s4259_s1 = sld [smem:[#allocation29_spill]] }
  0x29   : > { %4257 = sst [smem:[#allocation28_spill]] %s3120_s20  ;;  %s364_s16 = scalar_lea.vmem [#allocation5], %s3114_s17 }
  0x2a   : > { %s374_s14 = sshll.u32 %s364_s16, 4  ;;  %s3132_s25 = scalar_lea.sflag [#allocation6], %s360_s22  ;;  %s375_s14 = int_to_ptr.vmem [resolvable:$true] %s374_s14 }
  0x2b   : > { %s4260_s9 = smov 8   ;;  %s4261_s20 = smov 128  }
  0x2c   : > { %s4262_s4 = sld [smem:[#allocation31_spill]]  ;;  %s2968_s23 = smov [#allocation10]  }
  0x2d   : > { %s308_s16 = sshll.u32 %s2968_s23, 4  ;;  %s4263_s5 = sld [smem:[#allocation32_spill]]  ;;  %s309_s16 = int_to_ptr.vmem [resolvable:$true] %s308_s16 }
  0x2e   : > { %s371_s15 = scalar_lea.hbm %s4259_s1, %s3117_s19  ;;  %s2969_s27 = smov [#allocation11]  }
  0x2f   : > { %s372_s24 = sshll.u32 %s371_s15, 4  ;;  %s322_s10 = sshll.u32 %s2969_s27, 4  ;;  %s373_s24 = int_to_ptr.hbm [resolvable:$true] %s372_s24  ;;  %s323_s10 = int_to_ptr.vmem [resolvable:$true] %s322_s10 }
  0x30   : > { %2547 = dma.hbm_to_vmem [thread:$0]  (!%p3122_p12), %s373_s24, 512, %s375_s14, %s3132_s25, %s4261_s20, %s4261_s20, %s4260_s9  }
  0x31   : > { %s347_s24 = scalar_lea.hbm %s4221_s0, %s3117_s19  ;;  %s340_s23 = scalar_lea.vmem [#allocation2], %s3114_s17 }
  0x32   : > { %s306_s3 = sshll.u32 %s4262_s4, 4  ;;  %s350_s15 = sshll.u32 %s340_s23, 4  ;;  %s307_s3 = int_to_ptr.hbm [resolvable:$true] %s306_s3  ;;  %s351_s15 = int_to_ptr.vmem [resolvable:$true] %s350_s15 }
  0x33   : > { %s320_s22 = sshll.u32 %s4263_s5, 4  ;;  %s348_s4 = sshll.u32 %s347_s24, 4  ;;  %s321_s22 = int_to_ptr.hbm [resolvable:$true] %s320_s22  ;;  %s349_s4 = int_to_ptr.hbm [resolvable:$true] %s348_s4 }
  0x34   : > { %2537 = dma.hbm_to_vmem [thread:$0]  (!%p3085_p10), %s307_s3, 2048, %s309_s16, [#allocation9], %s4261_s20, %s4261_s20, %s4260_s9  }
  0x35   : > { %2540 = dma.hbm_to_vmem [thread:$0]  (!%p3085_p10), %s321_s22, 2048, %s323_s10, [#allocation12], %s4261_s20, %s4261_s20, %s4260_s9  }
  0x36   : > { %s4264_s3 = sand.u32 1, %s2951_s29   ;;  %s395_s22 = scalar_lea.hbm %s4223_s2, %s3117_s19 }
  0x37   : > { %s337_s16 = scalar_lea.sflag [#allocation3], %s4264_s3  ;;  %s388_s10 = scalar_lea.vmem [#allocation7], %s3114_s17 }
  0x38   : > { %2544 = dma.hbm_to_vmem [thread:$0]  (!%p3122_p12), %s349_s4, 512, %s351_s15, %s337_s16, %s4261_s20, %s4261_s20, %s4260_s9  }
  0x39   : > { %s398_s5 = sshll.u32 %s388_s10, 4  ;;  %s396_s1 = sshll.u32 %s395_s22, 4  ;;  %s399_s5 = int_to_ptr.vmem [resolvable:$true] %s398_s5  ;;  %s397_s1 = int_to_ptr.hbm [resolvable:$true] %s396_s1 }
  0x3a   : > { %2550 = dma.hbm_to_vmem [thread:$0]  (!%p3122_p12), %s397_s1, 512, %s399_s5, %s3132_s25, %s4261_s20, %s4261_s20, %s4260_s9  }
  0x3b   : > { %410 = sbr.rel (%p3077_p8) target bundleno = 542 (0x21e), region = 44  ;;  %s3182_s4 = sand.u32 (!%p3077_p8), 1, %s2947_s28  }
  0x3c   : > { %s2465_s19 = sshll.u32 (!%p3077_p8), %s3182_s4, 5  ;;  %s413_s17 = scalar_lea.sflag (!%p3077_p8), [#allocation3], %s3182_s4 }
  0x3d   : > { %s3186_s14 = scalar_lea.vmem (!%p3077_p8), [#allocation2], %s2465_s19 }
  0x40   : > { %2918 = dma.done.wait (%p3064_p4), %s413_s17, 512  }
  0x41   : > { %2920 = vsyncadd (%p3064_p4), %s413_s17, 4294966784  ;;  %s422_s5 = sand.u32 1, %s3053_s11   ;;  %s3195_s12 = scalar_lea.vmem [#allocation5], %s2465_s19 }
  0x42   : > { %s423_s9 = scalar_lea.sflag [#allocation6], %s422_s5 }
  0x43   : > { %2922 = dma.done.wait (%p3064_p4), %s423_s9, 1024  }
  0x44   : > { %2924 = vsyncadd (%p3064_p4), %s423_s9, 4294966272  ;;  %s3201_s18 = scalar_lea.vmem [#allocation7], %s2465_s19 }
  0x45   : > { %2926 = dma.done.wait (%p68_p1), [#allocation9], 4096  }
  0x46   : > { %2928 = vsyncadd (%p68_p1), [#allocation9], 4294963200 }
  0x47   : > { %2930 = dma.done.wait (%p68_p1), [#allocation12], 2048  }
  0x48   : > { %2932 = vsyncadd (%p68_p1), [#allocation12], 4294965248  ;;  %v530_v0 = vld [vmem:[#allocation8 + $0x78] sm:$0xff]  ;;  %v529_v2 = vld [vmem:[#allocation8 + $0x70] sm:$0xff]  ;;  %s2970_s13 = smov 64   ;;  %s2971_s20 = smov 96  }
  0x49   : > { %v1622_v1 = vld [vmem:[#allocation11 + $0x78] sm:$0xff]  ;;  %531 = vmatpush.msra.mxu0 %v530_v0  ;;  %v1621_v3 = vld [vmem:[#allocation11 + $0x70] sm:$0xff]  ;;  %v528_v4 = vld [vmem:[#allocation8 + $0x68] sm:$0xff]  ;;  %2491 = vmatpush.msra.mxu3 %v530_v0  ;;  %s2972_s25 = smov 32   ;;  %vm601_vm0 = vcmask 1047556   ;;  %vm1041_vm1 = vcmask 261120  }
  0x4a   : > { %1623 = vmatpush.msra.mxu2 %v1622_v1  ;;  %v1620_v5 = vld [vmem:[#allocation11 + $0x68] sm:$0xff]  ;;  %v1077_v6 = vld [vmem:[#allocation10 + $0x78] sm:$0xff]  ;;  %v1076_v7 = vld [vmem:[#allocation10 + $0x70] sm:$0xff]  ;;  %s3389_s24 = sshll.u32 %s3182_s4, 7  ;;  %s3887_s16 = sshll.u32 %s2955_s30, 7 }
  0x4b   : > { %532 = vmatpush.msra.mxu0 %v529_v2  ;;  %v527_v8 = vld [vmem:[#allocation8 + $0x60] sm:$0xff]  ;;  %1078 = vmatpush.msra.mxu1 %v1077_v6  ;;  %v1075_v10 = vld [vmem:[#allocation10 + $0x68] sm:$0xff]  ;;  %v526_v11 = vld [vmem:[#allocation8 + $0x58] sm:$0xff]  ;;  %s3412_s23 = scalar_lea.vmem [#allocation13], %s3389_s24  ;;  %s3483_s15 = scalar_lea.vmem [#allocation14], %s3389_s24 }
  0x4c   : > { %1624 = vmatpush.msra.mxu2 %v1621_v3  ;;  %v1619_v9 = vld [vmem:[#allocation11 + $0x60] sm:$0xff]  ;;  %2492 = vmatpush.msra.mxu3 %v529_v2  ;;  %v1618_v12 = vld [vmem:[#allocation11 + $0x58] sm:$0xff]  ;;  %v525_v14 = vld [vmem:[#allocation8 + $0x50] sm:$0xff]  ;;  %s3650_s3 = scalar_lea.vmem [#allocation16], %s3389_s24  ;;  %s2191_s27 = scalar_lea.hbm %s4228_s7, %s3887_s16 }
  0x4d   : > { %533 = vmatpush.msra.mxu0 %v528_v4  ;;  %1079 = vmatpush.msra.mxu1 %v1076_v7  ;;  %v1074_v13 = vld [vmem:[#allocation10 + $0x60] sm:$0xff]  ;;  %v1617_v15 = vld [vmem:[#allocation11 + $0x50] sm:$0xff]  ;;  %v1073_v16 = vld [vmem:[#allocation10 + $0x58] sm:$0xff]  ;;  %s2192_s22 = sshll.u32 %s3483_s15, 4  ;;  %s3911_s10 = sshll.u32 %s2191_s27, 4  ;;  %s3926_s22 = int_to_ptr.vmem [resolvable:$true] %s2192_s22  ;;  %s2195_s10 = int_to_ptr.hbm [resolvable:$true] %s3911_s10 }
  0x4e   : > { %1625 = vmatpush.msra.mxu2 %v1620_v5  ;;  %2493 = vmatpush.msra.mxu3 %v528_v4  ;;  %v524_v17 = vld [vmem:[#allocation8 + $0x48] sm:$0xff]  ;;  %v1072_v19 = vld [vmem:[#allocation10 + $0x50] sm:$0xff]  ;;  %v523_v20 = vld [vmem:[#allocation8 + $0x40] sm:$0xff]  ;;  %s3950_s1 = scalar_lea.sflag [#allocation15], %s422_s5  ;;  %s2823_s19 = sshra.s32 %s2195_s10, 4  ;;  %s2824_s19 = int_to_ptr.hbm [resolvable:$true] %s2823_s19 }
  0x4f   : > { %534 = vmatpush.msra.mxu0 %v527_v8  ;;  %1080 = vmatpush.msra.mxu1 %v1075_v10  ;;  %v1616_v18 = vld [vmem:[#allocation11 + $0x48] sm:$0xff]  ;;  %v1615_v21 = vld [vmem:[#allocation11 + $0x40] sm:$0xff]  ;;  %v522_v23 = vld [vmem:[#allocation8 + $0x38] sm:$0xff]  ;;  %s2825_s17 = scalar_lea.hbm %s2824_s19, 128  ;;  %p2830_p8 = scmp.lt.s32.totalorder %s2824_s19, %s4228_s7 }
  0x50   : > { %1626 = vmatpush.msra.mxu2 %v1619_v9  ;;  %2494 = vmatpush.msra.mxu3 %v527_v8  ;;  %v1071_v22 = vld [vmem:[#allocation10 + $0x48] sm:$0xff]  ;;  %v1614_v24 = vld [vmem:[#allocation11 + $0x38] sm:$0xff]  ;;  %v1070_v25 = vld [vmem:[#allocation10 + $0x40] sm:$0xff]  ;;  %p2826_p1 = scmp.ne.s32.totalorder %s2824_s19, %s2825_s17 }
  0x51   : > { %535 = vmatpush.msra.mxu0 %v526_v11  ;;  %1081 = vmatpush.msra.mxu1 %v1074_v13  ;;  %v521_v26 = vld [vmem:[#allocation8 + $0x30] sm:$0xff]  ;;  %v1069_v28 = vld [vmem:[#allocation10 + $0x38] sm:$0xff]  ;;  %v520_v29 = vld [vmem:[#allocation8 + $0x28] sm:$0xff] }
  0x52   : > { %1627 = vmatpush.msra.mxu2 %v1618_v12  ;;  %2495 = vmatpush.msra.mxu3 %v526_v11  ;;  %v1613_v27 = vld [vmem:[#allocation11 + $0x30] sm:$0xff]  ;;  %v1612_v30 = vld [vmem:[#allocation11 + $0x28] sm:$0xff]  ;;  %v519_v32 = vld [vmem:[#allocation8 + $0x20] sm:$0xff]  ;;  %v2973_v12 = vmov 1983009808   ;;  %p2827_p2 = pnand %p2826_p1, %p3104_p5 }
  0x53   : > { %536 = vmatpush.msra.mxu0 %v525_v14  ;;  %1082 = vmatpush.msra.mxu1 %v1073_v16  ;;  %v1068_v31 = vld [vmem:[#allocation10 + $0x30] sm:$0xff]  ;;  %v1611_v33 = vld [vmem:[#allocation11 + $0x20] sm:$0xff]  ;;  %v1067_v34 = vld [vmem:[#allocation10 + $0x28] sm:$0xff]  ;;  %v606_v13 = vunpack.c.l.s4 %v2973_v12 }
  0x54   : > { %1628 = vmatpush.msra.mxu2 %v1617_v15  ;;  %2496 = vmatpush.msra.mxu3 %v525_v14  ;;  %v518_v35 = vld [vmem:[#allocation8 + $0x18] sm:$0xff]  ;;  %v1066_v37 = vld [vmem:[#allocation10 + $0x20] sm:$0xff]  ;;  %v517_v38 = vld [vmem:[#allocation8 + $0x10] sm:$0xff]  ;;  %p2828_p4 = pneg %p2827_p2 }
  0x55   : > { %537 = vmatpush.msra.mxu0 %v524_v17  ;;  %1083 = vmatpush.msra.mxu1 %v1072_v19  ;;  %v1610_v36 = vld [vmem:[#allocation11 + $0x18] sm:$0xff]  ;;  %v1609_v39 = vld [vmem:[#allocation11 + $0x10] sm:$0xff]  ;;  %v516_v41 = vld [vmem:[#allocation8 + $0x8] sm:$0xff] }
  0x56   : > { %1629 = vmatpush.msra.mxu2 %v1616_v18  ;;  %2497 = vmatpush.msra.mxu3 %v524_v17  ;;  %v1065_v40 = vld [vmem:[#allocation10 + $0x18] sm:$0xff]  ;;  %v1608_v42 = vld [vmem:[#allocation11 + $0x8] sm:$0xff]  ;;  %v1064_v43 = vld [vmem:[#allocation10 + $0x10] sm:$0xff]  ;;  %v3322_v17 = vunpack.c.0.s8 %v606_v13 }
  0x57   : > { %538 = vmatpush.msra.mxu0 %v523_v20  ;;  %1084 = vmatpush.msra.mxu1 %v1071_v22  ;;  %v515_v44 = vld [vmem:[#allocation8] sm:$0xff]  ;;  %v1063_v48 = vld [vmem:[#allocation10 + $0x8] sm:$0xff]  ;;  %v513_v53 = vld [vmem:[%s3186_s14 + $0x10] sm:$0xff] }
  0x58   : > { %1630 = vmatpush.msra.mxu2 %v1615_v21  ;;  %2498 = vmatpush.msra.mxu3 %v523_v20  ;;  %v1607_v45 = vld [vmem:[#allocation11] sm:$0xff]  ;;  %v512_v49 = vld [vmem:[%s3186_s14 + $0x8] sm:$0xff]  ;;  %v1605_v55 = vld [vmem:[%s3201_s18 + $0x10] sm:$0xff]  ;;  %v2974_v20 = vmov 1934713408  }
  0x59   : > { %539 = vmatpush.msra.mxu0 %v522_v23  ;;  %1085 = vmatpush.msra.mxu1 %v1070_v25  ;;  %v511_v46 = vld [vmem:[%s3186_s14] sm:$0xff]  ;;  %v1604_v52 = vld [vmem:[%s3201_s18 + $0x8] sm:$0xff]  ;;  %v514_v56 = vld [vmem:[%s3186_s14 + $0x18] sm:$0xff]  ;;  %v630_v21 = vunpack.c.l.s4 %v2974_v20 }
  0x5a   : > { %1631 = vmatpush.msra.mxu2 %v1614_v24  ;;  %2499 = vmatpush.msra.mxu3 %v522_v23  ;;  %v1603_v47 = vld [vmem:[%s3201_s18] sm:$0xff]  ;;  %v1059_v54 = vld [vmem:[%s3195_s12 + $0x8] sm:$0xff]  ;;  %v1060_v57 = vld [vmem:[%s3195_s12 + $0x10] sm:$0xff] }
  0x5b   : > { %540 = vmatpush.msra.mxu0 %v521_v26  ;;  %1086 = vmatpush.msra.mxu1 %v1069_v28  ;;  %v1062_v50 = vld [vmem:[#allocation10] sm:$0xff]  ;;  %v1606_v58 = vld [vmem:[%s3201_s18 + $0x18] sm:$0xff] }
  0x5c   : > { %1632 = vmatpush.msra.mxu2 %v1613_v27  ;;  %2500 = vmatpush.msra.mxu3 %v521_v26  ;;  %v1058_v51 = vld [vmem:[%s3195_s12] sm:$0xff]  ;;  %v1061_v59 = vld [vmem:[%s3195_s12 + $0x18] sm:$0xff]  ;;  %s2829_s12 = scalar_lea.hbm %s4228_s7, 256 }
  0x5d   : > { %541 = vmatpush.msra.mxu0 %v520_v29  ;;  %1087 = vmatpush.msra.mxu1 %v1068_v31  ;;  %p2831_p10 = scmp.lt.s32.totalorder %s2829_s12, %s2825_s17 }
  0x5e   : > { %1633 = vmatpush.msra.mxu2 %v1612_v30  ;;  %2501 = vmatpush.msra.mxu3 %v520_v29 }
  0x5f   : > { %542 = vmatpush.msra.mxu0 %v519_v32  ;;  %1088 = vmatpush.msra.mxu1 %v1067_v34  ;;  %p2832_p13 = por %p2831_p10, %p2830_p8 }
  0x60   : > { %1634 = vmatpush.msra.mxu2 %v1611_v33  ;;  %2502 = vmatpush.msra.mxu3 %v519_v32 }
  0x61   : > { %543 = vmatpush.msra.mxu0 %v518_v35  ;;  %1089 = vmatpush.msra.mxu1 %v1066_v37  ;;  %p2833_p0 = pnand %p2832_p13, %p2828_p4 }
  0x62   : > { %1635 = vmatpush.msra.mxu2 %v1610_v36  ;;  %2503 = vmatpush.msra.mxu3 %v518_v35  ;;  %v3337_v36 = vunpack.c.0.s8 %v630_v21 }
  0x63   : > { %544 = vmatpush.msra.mxu0 %v517_v38  ;;  %1090 = vmatpush.msra.mxu1 %v1065_v40 }
  0x64   : > { %1636 = vmatpush.msra.mxu2 %v1609_v39  ;;  %2504 = vmatpush.msra.mxu3 %v517_v38 }
  0x65   : > { %545 = vmatpush.msra.mxu0 %v516_v41  ;;  %1091 = vmatpush.msra.mxu1 %v1064_v43 }
  0x66   : > { %1637 = vmatpush.msra.mxu2 %v1608_v42  ;;  %2505 = vmatpush.msra.mxu3 %v516_v41 }
  0x67   : > { %546 = vmatpush.msra.mxu0 %v515_v44  ;;  %1092 = vmatpush.msra.mxu1 %v1063_v48 }
  0x68   : > { %1638 = vmatpush.msra.mxu2 %v1607_v45  ;;  %547 = vmatmul.f32.vlgmr.msra.gmra.mxu0 %v511_v46 }
  0x69   : > { %1639 = vmatmul.f32.vlgmr.msra.gmra.mxu2 %v1603_v47  ;;  %2506 = vmatpush.msra.mxu3 %v515_v44 }
  0x6a   : > { %550 = vmatmul.f32.vlgmr.msra.gmra.mxu3 %v512_v49  ;;  %1093 = vmatpush.msra.mxu1 %v1062_v50 }
  0x6b   : > { %1094 = vmatmul.f32.vlgmr.msra.gmra.mxu1 %v1058_v51 }
  0x71   : > { %1642 = vmatmul.f32.gmra.mxu2 %v1604_v52 }
  0x72   : > { %553 = vmatmul.f32.gmra.mxu3 %v513_v53 }
  0x73   : > { %1097 = vmatmul.f32.gmra.mxu1 %v1059_v54 }
  0x79   : > { %1645 = vmatmul.f32.gmra.mxu2 %v1605_v55 }
  0x7a   : > { %556 = vmatmul.f32.gmra.mxu3 %v514_v56 }
  0x7b   : > { %1100 = vmatmul.f32.gmra.mxu1 %v1060_v57 }
  0x81   : > { %1648 = vmatmul.f32.gmra.mxu2 %v1606_v58 }
  0x83   : > { %1103 = vmatmul.f32.gmra.mxu1 %v1061_v59 }
  0xe5   : > { %v3223_v60 = vpop.f32.mrf.mxu0 }
  0xe6   : > { %576 = vrot.lane.b32.xlu2 %v3223_v60, %s2970_s13  ;;  %564 = vrot.lane.b32.xlu0 %v3223_v60, %s2971_s20  ;;  %v603_v14 = vrot.slane %v3223_v60, 4 }
  0xe8   : > { %v3229_v61 = vpop.f32.mrf.mxu1 }
  0xe9   : > { %v1149_v19 = vrot.slane %v3229_v61, 4 }
  0xec   : > { %v3231_v62 = vpop.f32.mrf.mxu2 }
  0xed   : > { %1656 = vrot.lane.b32.xlu1 %v3231_v62, %s2971_s20  ;;  %v3247_v0 = vpop.f32.mrf.mxu3  ;;  %v1694_v24 = vrot.slane %v3231_v62, 4 }
  0xee   : > { %588 = vrot.lane.b32.xlu2 %v3223_v60, %s2972_s25  ;;  %1111 = vrot.lane.b32.xlu0 %v3229_v61, %s2971_s20  ;;  %v659_v27 = vrot.slane %v3247_v0, 4 }
  0xf0   : > { %v3239_v63 = vpop.f32.mrf.mxu1 }
  0xf1   : > { %v1205_v30 = vrot.slane %v3239_v63, 4 }
  0xf4   : > { %v3263_v2 = vpop.f32.mrf.mxu2 }
  0xf5   : > { %1113 = vrot.lane.b32.xlu1 %v3239_v63, %s2971_s20  ;;  %v3255_v1 = vpop.f32.mrf.mxu3  ;;  %v1750_v38 = vrot.slane %v3263_v2, 4 }
  0xf6   : > { %1123 = vrot.lane.b32.xlu2 %v3229_v61, %s2970_s13  ;;  %1135 = vrot.lane.b32.xlu0 %v3229_v61, %s2972_s25  ;;  %v715_v34 = vrot.slane %v3255_v1, 4 }
  0xf8   : > { %v3271_v3 = vpop.f32.mrf.mxu1 }
  0xf9   : > { %v1261_v46 = vrot.slane %v3271_v3, 4 }
  0xfc   : > { %v3287_v5 = vpop.f32.mrf.mxu2 }
  0xfd   : > { %1137 = vrot.lane.b32.xlu1 %v3239_v63, %s2972_s25  ;;  %v3279_v4 = vpop.f32.mrf.mxu3  ;;  %v1806_v50 = vrot.slane %v3287_v5, 4 }
  0xfe   : > { %578 = vrot.lane.b32.xlu2 %v3247_v0, %s2970_s13  ;;  %566 = vrot.lane.b32.xlu0 %v3247_v0, %s2971_s20  ;;  %v771_v35 = vrot.slane %v3279_v4, 4 }
 0x100   : > { %v3295_v6 = vpop.f32.mrf.mxu1 }
 0x101   : > { %v1317_v43 = vrot.slane %v3295_v6, 4 }
 0x104   : > { %v3303_v7 = vpop.f32.mrf.mxu2 }
 0x105   : > { %568 = vrot.lane.b32.xlu1 %v3255_v1, %s2971_s20  ;;  %v1862_v47 = vrot.slane %v3303_v7, 4 }
 0x106   : > { %1680 = vrot.lane.b32.xlu2 %v3231_v62, %s2972_s25  ;;  %590 = vrot.lane.b32.xlu0 %v3247_v0, %s2972_s25 }
 0x10d   : > { %592 = vrot.lane.b32.xlu1 %v3255_v1, %s2972_s25 }
 0x10e   : > { %1658 = vrot.lane.b32.xlu2 %v3263_v2, %s2971_s20  ;;  %1668 = vrot.lane.b32.xlu0 %v3231_v62, %s2970_s13 }
 0x115   : > { %1670 = vrot.lane.b32.xlu1 %v3263_v2, %s2970_s13 }
 0x116   : > { %1139 = vrot.lane.b32.xlu2 %v3271_v3, %s2972_s25  ;;  %1125 = vrot.lane.b32.xlu0 %v3239_v63, %s2970_s13 }
 0x11d   : > { %1127 = vrot.lane.b32.xlu1 %v3271_v3, %s2970_s13 }
 0x11e   : > { %594 = vrot.lane.b32.xlu2 %v3279_v4, %s2972_s25  ;;  %580 = vrot.lane.b32.xlu0 %v3255_v1, %s2970_s13 }
 0x125   : > { %1115 = vrot.lane.b32.xlu1 %v3271_v3, %s2971_s20 }
 0x126   : > { %1672 = vrot.lane.b32.xlu2 %v3287_v5, %s2970_s13  ;;  %1660 = vrot.lane.b32.xlu0 %v3287_v5, %s2971_s20 }
 0x12d   : > { %570 = vrot.lane.b32.xlu1 %v3279_v4, %s2971_s20 }
 0x12e   : > { %1129 = vrot.lane.b32.xlu2 %v3295_v6, %s2970_s13  ;;  %1141 = vrot.lane.b32.xlu0 %v3295_v6, %s2972_s25 }
 0x135   : > { %582 = vrot.lane.b32.xlu1 %v3279_v4, %s2970_s13 }
 0x136   : > { %1117 = vrot.lane.b32.xlu2 %v3295_v6, %s2971_s20  ;;  %1674 = vrot.lane.b32.xlu0 %v3303_v7, %s2970_s13 }
 0x13d   : > { %1662 = vrot.lane.b32.xlu1 %v3303_v7, %s2971_s20 }
 0x13e   : > { %1686 = vrot.lane.b32.xlu2 %v3303_v7, %s2972_s25  ;;  %1682 = vrot.lane.b32.xlu0 %v3263_v2, %s2972_s25 }
 0x140   : > { %v577_v8 = vpop.permute.xlu2 %576 }
 0x141   : > { %v600_v10 = vrot.slane %v577_v8, 4  ;;  %v604_v18 = vsel %vm601_vm0, %v577_v8, %v603_v14 }
 0x142   : > { %v612_v31 = vperm.slane %v604_v18, %v3322_v17 }
 0x143   : > { %v602_v15 = vsel %vm601_vm0, %v600_v10, %v3223_v60 }
 0x144   : > { %v608_v22 = vperm.slane %v602_v15, %v3322_v17  ;;  %v639_v48 = vrot.slane %v612_v31, 4 }
 0x145   : > { %1684 = vrot.lane.b32.xlu1 %v3287_v5, %s2972_s25 }
 0x146   : > { %v627_v39 = vrot.slane %v608_v22, 4 }
 0x148   : > { %v589_v9 = vpop.permute.xlu2 %588 }
 0x149   : > { %v613_v23 = vrot.slane %v589_v9, 4 }
 0x150   : > { %v1124_v11 = vpop.permute.xlu2 %1123 }
 0x151   : > { %v1147_v16 = vrot.slane %v1124_v11, 4  ;;  %v1150_v26 = vsel %vm601_vm0, %v1124_v11, %v1149_v19 }
 0x152   : > { %v3345_v41 = vperm.slane %v1150_v26, %v3322_v17 }
 0x153   : > { %v1148_v25 = vsel %vm601_vm0, %v1147_v16, %v3229_v61 }
 0x154   : > { %v3342_v40 = vperm.slane %v1148_v25, %v3322_v17  ;;  %v1185_v57 = vrot.slane %v3345_v41, 4 }
 0x156   : > { %v1173_v56 = vrot.slane %v3342_v40, 4 }
 0x158   : > { %v579_v28 = vpop.permute.xlu2 %578  ;;  %v565_v29 = vpop.permute.xlu0 %564 }
 0x159   : > { %v614_v32 = vsel %vm601_vm0, %v613_v23, %v565_v29  ;;  %v615_v33 = vrot.slane %v565_v29, 4  ;;  %v657_v51 = vrot.slane %v579_v28, 4  ;;  %v660_v12 = vsel %vm601_vm0, %v579_v28, %v659_v27 }
 0x15a   : > { %v620_v37 = vperm.slane %v614_v32, %v3322_v17 }
 0x15b   : > { %v616_v42 = vsel %vm601_vm0, %v589_v9, %v615_v33  ;;  %v658_v16 = vsel %vm601_vm0, %v657_v51, %v3247_v0 }
 0x15c   : > { %v624_v44 = vperm.slane %v616_v42, %v3322_v17  ;;  %v625_v45 = vrot.slane %v620_v37, 4  ;;  %v628_v49 = vsel %vm601_vm0, %v620_v37, %v627_v39  ;;  %v3378_v37 = vperm.slane %v658_v16, %v3322_v17 }
 0x15d   : > { %v636_v53 = vperm.slane %v628_v49, %v3337_v36  ;;  %v3381_v39 = vperm.slane %v660_v12, %v3322_v17 }
 0x15e   : > { %v626_v52 = vsel %vm601_vm0, %v625_v45, %v608_v22  ;;  %v637_v54 = vrot.slane %v624_v44, 4  ;;  %v640_v59 = vsel %vm601_vm0, %v624_v44, %v639_v48 }
 0x15f   : > { %v1657_v55 = vpop.permute.xlu1 %1656  ;;  %v632_v58 = vperm.slane %v626_v52, %v3337_v36  ;;  %v648_v61 = vperm.slane %v640_v59, %v3337_v36  ;;  %v651_v8 = vrot.slane %v636_v53, 4 }
 0x160   : > { %v638_v60 = vsel %vm601_vm0, %v637_v54, %v612_v31  ;;  %v1706_v9 = vrot.slane %v1657_v55, 4  ;;  %v1681_v10 = vpop.permute.xlu2 %1680  ;;  %v1112_v11 = vpop.permute.xlu0 %1111 }
 0x161   : > { %v644_v13 = vperm.slane %v638_v60, %v3337_v36  ;;  %v649_v14 = vrot.slane %v632_v58, 4  ;;  %v1704_v15 = vrot.slane %v1681_v10, 4  ;;  %v652_v18 = vsel %vm601_vm0, 0.0, %v651_v8 }
 0x162   : > { %v655_v19 = vrot.slane %v648_v61, 4  ;;  %v825_v20 = vsel %vm601_vm0, %v651_v8, %v632_v58  ;;  %v830_v25 = vrot.slane %v652_v18, 4  ;;  %v1707_v0 = vsel %vm601_vm0, %v1681_v10, %v1706_v9 }
 0x163   : > { %v650_v21 = vsel %vm601_vm0, 0.0, %v649_v14  ;;  %v653_v22 = vrot.slane %v644_v13, 4  ;;  %v829_v23 = vperm.slane %v825_v20, %v3322_v17  ;;  %v1705_v28 = vsel %vm601_vm0, %v1704_v15, %v1657_v55 }
 0x164   : > { %v656_v26 = vsel %vm601_vm0, 0.0, %v655_v19  ;;  %v836_v27 = vsel %vm601_vm0, %v655_v19, %v644_v13  ;;  %v831_v31 = vsel %vm601_vm0, %v830_v25, %v650_v21  ;;  %v3386_v51 = vperm.slane %v1707_v0, %v3322_v17 }
 0x165   : > { %v654_v29 = vsel %vm601_vm0, 0.0, %v653_v22  ;;  %v840_v32 = vperm.slane %v836_v27, %v3322_v17  ;;  %v841_v33 = vrot.slane %v656_v26, 4  ;;  %v835_v42 = vperm.slane %v831_v31, %v3322_v17 }
 0x166   : > { %v849_v44 = vrot.slane %v829_v23, 4  ;;  %v1161_v52 = vrot.slane %v1112_v11, 4  ;;  %v3394_v58 = vperm.slane %v1705_v28, %v3322_v17 }
 0x167   : > { %v1114_v45 = vpop.permute.xlu1 %1113  ;;  %v842_v48 = vsel %vm601_vm0, %v841_v33, %v654_v29  ;;  %v861_v49 = vrot.slane %v840_v32, 4  ;;  %v847_v54 = vrot.slane %v835_v42, 4 }
 0x168   : > { %v846_v53 = vperm.slane %v842_v48, %v3322_v17  ;;  %v850_v55 = vsel %vm601_vm0, %v835_v42, %v849_v44  ;;  %v3396_v59 = vpop.permute.xlu2 %1658  ;;  %v1136_v60 = vpop.permute.xlu0 %1135  ;;  %v1217_v8 = vrot.slane %v1114_v45, 4 }
 0x169   : > { %v858_v61 = vperm.slane %v850_v55, %v3337_v36  ;;  %v1159_v9 = vrot.slane %v1136_v60, 4  ;;  %v1162_v10 = vsel %vm601_vm0, %v1136_v60, %v1161_v52  ;;  %v848_v12 = vsel %vm601_vm0, %v847_v54, %v829_v23 }
 0x16a   : > { %v859_v13 = vrot.slane %v846_v53, 4  ;;  %v862_v14 = vsel %vm601_vm0, %v846_v53, %v861_v49  ;;  %v1170_v15 = vperm.slane %v1162_v10, %v3322_v17  ;;  %v854_v16 = vperm.slane %v848_v12, %v3337_v36 }
 0x16b   : > { %v870_v18 = vperm.slane %v862_v14, %v3337_v36  ;;  %v877_v19 = vrot.slane %v858_v61, 4  ;;  %v1160_v20 = vsel %vm601_vm0, %v1159_v9, %v1112_v11 }
 0x16c   : > { %v860_v21 = vsel %vm601_vm0, %v859_v13, %v840_v32  ;;  %v1166_v22 = vperm.slane %v1160_v20, %v3322_v17  ;;  %v1183_v25 = vrot.slane %v1170_v15, 4  ;;  %v1186_v23 = vsel %vm601_vm0, %v1170_v15, %v1185_v57 }
 0x16d   : > { %v866_v26 = vperm.slane %v860_v21, %v3337_v36  ;;  %v873_v27 = vrot.slane %v854_v16, 4  ;;  %v875_v28 = vrot.slane %v870_v18, 4  ;;  %v878_v0 = vsel %vm601_vm0, %v870_v18, %v877_v19 }
 0x16e   : > { %1054 = vst.msk [vmem:[%s3412_s23 + $0x60] sm:$0xff] %vm1041_vm1, %v878_v0  ;;  %v1171_v11 = vrot.slane %v1166_v22, 4  ;;  %v1174_v29 = vsel %vm601_vm0, %v1166_v22, %v1173_v56  ;;  %v1184_v57 = vsel %vm601_vm0, %v1183_v25, %v3345_v41  ;;  %v1194_v31 = vperm.slane %v1186_v23, %v3337_v36 }
 0x16f   : > { %v1138_v32 = vpop.permute.xlu1 %1137  ;;  %v871_v33 = vrot.slane %v866_v26, 4  ;;  %v874_v42 = vsel %vm601_vm0, %v866_v26, %v873_v27  ;;  %v876_v44 = vsel %vm601_vm0, %v875_v28, %v858_v61  ;;  %v1182_v48 = vperm.slane %v1174_v29, %v3337_v36 }
 0x170   : > { %1046 = vst.msk [vmem:[%s3412_s23 + $0x20] sm:$0xff] %vm1041_vm1, %v874_v42  ;;  %v1172_v56 = vsel %vm601_vm0, %v1171_v11, %v3342_v40  ;;  %v1190_v49 = vperm.slane %v1184_v57, %v3337_v36  ;;  %v1201_v52 = vrot.slane %v1194_v31, 4  ;;  %v1215_v41 = vrot.slane %v1138_v32, 4  ;;  %v3430_v53 = vpop.permute.xlu2 %1139  ;;  %v567_v54 = vpop.permute.xlu0 %566 }
 0x171   : > { %v872_v55 = vsel %vm601_vm0, %v871_v33, %v854_v16  ;;  %1050 = vst.msk [vmem:[%s3412_s23 + $0x40] sm:$0xff] %vm1041_vm1, %v876_v44  ;;  %v1178_v60 = vperm.slane %v1172_v56, %v3337_v36  ;;  %v1197_v61 = vrot.slane %v1182_v48, 4  ;;  %v1218_v9 = vsel %vm601_vm0, %v1138_v32, %v1217_v8 }
 0x172   : > { %1042 = vst.msk [vmem:[%s3412_s23] sm:$0xff] %vm1041_vm1, %v872_v55  ;;  %v1199_v10 = vrot.slane %v1190_v49, 4  ;;  %v1202_v40 = vsel %vm601_vm0, 0.0, %v1201_v52  ;;  %v1382_v12 = vsel %vm601_vm0, %v1201_v52, %v1190_v49  ;;  %v1216_v13 = vsel %vm601_vm0, %v1215_v41, %v1114_v45 }
 0x173   : > { %v1195_v14 = vrot.slane %v1178_v60, 4  ;;  %v1198_v15 = vsel %vm601_vm0, 0.0, %v1197_v61  ;;  %v1371_v16 = vsel %vm601_vm0, %v1197_v61, %v1178_v60  ;;  %v1386_v18 = vperm.slane %v1382_v12, %v3322_v17 }
 0x174   : > { %v1200_v19 = vsel %vm601_vm0, 0.0, %v1199_v10  ;;  %v1375_v8 = vperm.slane %v1371_v16, %v3322_v17  ;;  %v1376_v20 = vrot.slane %v1198_v15, 4  ;;  %v1387_v21 = vrot.slane %v1202_v40, 4 }
 0x175   : > { %v683_v22 = vrot.slane %v3378_v37, 4  ;;  %v695_v25 = vrot.slane %v3381_v39, 4  ;;  %v1196_v23 = vsel %vm601_vm0, 0.0, %v1195_v14  ;;  %v1407_v45 = vrot.slane %v1386_v18, 4 }
 0x176   : > { %v1377_v26 = vsel %vm601_vm0, %v1376_v20, %v1196_v23  ;;  %v1388_v27 = vsel %vm601_vm0, %v1387_v21, %v1200_v19  ;;  %v1395_v28 = vrot.slane %v1375_v8, 4  ;;  %v3453_v0 = vperm.slane %v1216_v13, %v3322_v17 }
 0x177   : > { %v569_v11 = vpop.permute.xlu1 %568  ;;  %v1728_v29 = vrot.slane %v3386_v51, 4  ;;  %v1381_v57 = vperm.slane %v1377_v26, %v3322_v17  ;;  %v1392_v31 = vperm.slane %v1388_v27, %v3322_v17  ;;  %v3459_v32 = vperm.slane %v1218_v9, %v3322_v17 }
 0x178   : > { %v1716_v33 = vrot.slane %v3394_v58, 4  ;;  %v1762_v42 = vrot.slane %v3396_v59, 4  ;;  %v1271_v44 = vrot.slane %v3430_v53, 4  ;;  %v671_v48 = vrot.slane %v567_v54, 4  ;;  %v3464_v56 = vpop.permute.xlu2 %594  ;;  %v591_v49 = vpop.permute.xlu0 %590 }
 0x179   : > { %v1393_v52 = vrot.slane %v1381_v57, 4  ;;  %v1396_v41 = vsel %vm601_vm0, %v1381_v57, %v1395_v28  ;;  %v1405_v55 = vrot.slane %v1392_v31, 4  ;;  %v1408_v60 = vsel %vm601_vm0, %v1392_v31, %v1407_v45 }
 0x17a   : > { %v1404_v61 = vperm.slane %v1396_v41, %v3337_v36  ;;  %v1416_v9 = vperm.slane %v1408_v60, %v3337_v36  ;;  %v1227_v10 = vrot.slane %v3453_v0, 4  ;;  %v669_v40 = vrot.slane %v591_v49, 4 }
 0x17b   : > { %v1394_v12 = vsel %vm601_vm0, %v1393_v52, %v1375_v8  ;;  %v1406_v13 = vsel %vm601_vm0, %v1405_v55, %v1386_v18  ;;  %v1239_v14 = vrot.slane %v3459_v32, 4  ;;  %v672_v15 = vsel %vm601_vm0, %v591_v49, %v671_v48 }
 0x17c   : > { %v1400_v16 = vperm.slane %v1394_v12, %v3337_v36  ;;  %v1412_v19 = vperm.slane %v1406_v13, %v3337_v36  ;;  %v1421_v20 = vrot.slane %v1416_v9, 4  ;;  %v1423_v21 = vrot.slane %v1404_v61, 4 }
 0x17d   : > { %v727_v23 = vrot.slane %v569_v11, 4  ;;  %v781_v45 = vrot.slane %v3464_v56, 4  ;;  %v670_v26 = vsel %vm601_vm0, %v669_v40, %v567_v54  ;;  %v680_v8 = vperm.slane %v672_v15, %v3322_v17 }
 0x17e   : > { %v1417_v27 = vrot.slane %v1412_v19, 4  ;;  %v1419_v18 = vrot.slane %v1400_v16, 4  ;;  %v1422_v28 = vsel %vm601_vm0, %v1421_v20, %v1404_v61  ;;  %v1424_v57 = vsel %vm601_vm0, %v1416_v9, %v1423_v21 }
 0x17f   : > { %v593_v31 = vpop.permute.xlu1 %592  ;;  %1595 = vst.msk [vmem:[%s3483_s15 + $0x40] sm:$0xff] %vm1041_vm1, %v1422_v28  ;;  %v676_v48 = vperm.slane %v670_v26, %v3322_v17  ;;  %v693_v54 = vrot.slane %v680_v8, 4  ;;  %v696_v49 = vsel %vm601_vm0, %v680_v8, %v695_v25 }
 0x180   : > { %v725_v52 = vrot.slane %v593_v31, 4  ;;  %v1418_v41 = vsel %vm601_vm0, %v1417_v27, %v1400_v16  ;;  %v1420_v55 = vsel %vm601_vm0, %v1412_v19, %v1419_v18  ;;  %1599 = vst.msk [vmem:[%s3483_s15 + $0x60] sm:$0xff] %vm1041_vm1, %v1424_v57  ;;  %v704_v60 = vperm.slane %v696_v49, %v3337_v36  ;;  %v1673_v9 = vpop.permute.xlu2 %1672 }
 0x181   : > { %v728_v61 = vsel %vm601_vm0, %v593_v31, %v727_v23  ;;  %1587 = vst.msk [vmem:[%s3483_s15] sm:$0xff] %vm1041_vm1, %v1418_v41  ;;  %v681_v40 = vrot.slane %v676_v48, 4  ;;  %v684_v12 = vsel %vm601_vm0, %v676_v48, %v683_v22  ;;  %v694_v25 = vsel %vm601_vm0, %v693_v54, %v3381_v39 }
 0x182   : > { %v726_v13 = vsel %vm601_vm0, %v725_v52, %v569_v11  ;;  %1591 = vst.msk [vmem:[%s3483_s15 + $0x20] sm:$0xff] %vm1041_vm1, %v1420_v55  ;;  %v692_v15 = vperm.slane %v684_v12, %v3337_v36  ;;  %v700_v16 = vperm.slane %v694_v25, %v3337_v36  ;;  %v711_v19 = vrot.slane %v704_v60, 4  ;;  %v1669_v60 = vpop.permute.xlu0 %1668 }
 0x183   : > { %v3506_v20 = vperm.slane %v726_v13, %v3322_v17  ;;  %v682_v21 = vsel %vm601_vm0, %v681_v40, %v3378_v37  ;;  %v3511_v22 = vperm.slane %v728_v61, %v3322_v17  ;;  %v1804_v23 = vrot.slane %v1673_v9, 4 }
 0x184   : > { %v1807_v39 = vsel %vm601_vm0, %v1673_v9, %v1806_v50  ;;  %v688_v11 = vperm.slane %v682_v21, %v3337_v36  ;;  %v707_v26 = vrot.slane %v692_v15, 4  ;;  %v709_v8 = vrot.slane %v700_v16, 4 }
 0x185   : > { %v712_v27 = vsel %vm601_vm0, 0.0, %v711_v19  ;;  %v890_v18 = vsel %vm601_vm0, %v711_v19, %v700_v16  ;;  %v737_v57 = vrot.slane %v3506_v20, 4  ;;  %v749_v37 = vrot.slane %v3511_v22, 4 }
 0x186   : > { %v895_v28 = vrot.slane %v712_v27, 4  ;;  %v705_v31 = vrot.slane %v688_v11, 4  ;;  %v708_v48 = vsel %vm601_vm0, 0.0, %v707_v26  ;;  %v710_v54 = vsel %vm601_vm0, 0.0, %v709_v8 }
 0x187   : > { %v879_v50 = vsel %vm601_vm0, %v707_v26, %v688_v11  ;;  %v884_v52 = vrot.slane %v708_v48, 4  ;;  %v894_v41 = vperm.slane %v890_v18, %v3322_v17  ;;  %v1805_v40 = vsel %vm601_vm0, %v1804_v23, %v3287_v5  ;;  %v1671_v25 = vpop.permute.xlu1 %1670 }
 0x188   : > { %v883_v49 = vperm.slane %v879_v50, %v3322_v17  ;;  %v896_v55 = vsel %vm601_vm0, %v895_v28, %v710_v54  ;;  %v706_v61 = vsel %vm601_vm0, 0.0, %v705_v31  ;;  %v3532_v12 = vperm.slane %v1807_v39, %v3322_v17 }
 0x189   : > { %v900_v9 = vperm.slane %v896_v55, %v3322_v17  ;;  %v885_v13 = vsel %vm601_vm0, %v884_v52, %v706_v61  ;;  %v915_v16 = vrot.slane %v894_v41, 4  ;;  %v3536_v19 = vperm.slane %v1805_v40, %v3322_v17 }
 0x18a   : > { %v903_v15 = vrot.slane %v883_v49, 4  ;;  %v889_v21 = vperm.slane %v885_v13, %v3322_v17  ;;  %v1842_v26 = vrot.slane %v3532_v12, 4  ;;  %v1692_v8 = vrot.slane %v1669_v60, 4 }
 0x18b   : > { %v913_v11 = vrot.slane %v900_v9, 4  ;;  %v916_v27 = vsel %vm601_vm0, %v900_v9, %v915_v16  ;;  %v1830_v5 = vrot.slane %v3536_v19, 4  ;;  %v1695_v23 = vsel %vm601_vm0, %v1669_v60, %v1694_v24 }
 0x18c   : > { %v1748_v39 = vrot.slane %v1671_v25, 4  ;;  %v901_v18 = vrot.slane %v889_v21, 4  ;;  %v904_v28 = vsel %vm601_vm0, %v889_v21, %v903_v15  ;;  %v924_v48 = vperm.slane %v916_v27, %v3337_v36 }
 0x18d   : > { %v914_v31 = vsel %vm601_vm0, %v913_v11, %v894_v41  ;;  %v912_v54 = vperm.slane %v904_v28, %v3337_v36  ;;  %v1693_v52 = vsel %vm601_vm0, %v1692_v8, %v3231_v62  ;;  %v1703_v55 = vperm.slane %v1695_v23, %v3322_v17 }
 0x18e   : > { %v920_v50 = vperm.slane %v914_v31, %v3337_v36  ;;  %v902_v24 = vsel %vm601_vm0, %v901_v18, %v883_v49  ;;  %v929_v60 = vrot.slane %v924_v48, 4  ;;  %v1699_v61 = vperm.slane %v1693_v52, %v3322_v17 }
 0x18f   : > { %v1749_v41 = vsel %vm601_vm0, %v1748_v39, %v3263_v2  ;;  %v908_v9 = vperm.slane %v902_v24, %v3337_v36  ;;  %v931_v13 = vrot.slane %v912_v54, 4  ;;  %v1729_v62 = vsel %vm601_vm0, %v1728_v29, %v1703_v55  ;;  %v1130_v29 = vpop.permute.xlu2 %1129 }
 0x190   : > { %v925_v40 = vrot.slane %v920_v50, 4  ;;  %v930_v15 = vsel %vm601_vm0, %v929_v60, %v912_v54  ;;  %v1717_v49 = vsel %vm601_vm0, %v1716_v33, %v1699_v61  ;;  %v1718_v16 = vrot.slane %v1699_v61, 4 }
 0x191   : > { %v1730_v21 = vrot.slane %v1703_v55, 4  ;;  %v927_v8 = vrot.slane %v908_v9, 4  ;;  %v932_v27 = vsel %vm601_vm0, %v924_v48, %v931_v13  ;;  %1051 = vst.msk [vmem:[%s3412_s23 + $0x48] sm:$0xff] %vm1041_vm1, %v930_v15  ;;  %v1723_v23 = vperm.slane %v1717_v49, %v3337_v36 }
 0x192   : > { %v926_v11 = vsel %vm601_vm0, %v925_v40, %v908_v9  ;;  %v1719_v39 = vsel %vm601_vm0, %v3394_v58, %v1718_v16  ;;  %v1735_v18 = vperm.slane %v1729_v62, %v3337_v36  ;;  %v1751_v28 = vsel %vm601_vm0, %v1671_v25, %v1750_v38  ;;  %1055 = vst.msk [vmem:[%s3412_s23 + $0x68] sm:$0xff] %vm1041_vm1, %v932_v27  ;;  %v1126_v40 = vpop.permute.xlu0 %1125 }
 0x193   : > { %1043 = vst.msk [vmem:[%s3412_s23 + $0x8] sm:$0xff] %vm1041_vm1, %v926_v11  ;;  %v1731_v33 = vsel %vm601_vm0, %v3386_v51, %v1730_v21  ;;  %v928_v31 = vsel %vm601_vm0, %v920_v50, %v927_v8  ;;  %v1727_v48 = vperm.slane %v1719_v39, %v3337_v36  ;;  %v1740_v52 = vrot.slane %v1723_v23, 4 }
 0x194   : > { %v1739_v54 = vperm.slane %v1731_v33, %v3337_v36  ;;  %1047 = vst.msk [vmem:[%s3412_s23 + $0x28] sm:$0xff] %vm1041_vm1, %v928_v31  ;;  %v1744_v58 = vrot.slane %v1735_v18, 4  ;;  %v3588_v51 = vperm.slane %v1749_v41, %v3322_v17  ;;  %v3591_v55 = vperm.slane %v1751_v28, %v3322_v17 }
 0x195   : > { %v1315_v2 = vrot.slane %v1130_v29, 4  ;;  %v1741_v38 = vsel %vm601_vm0, 0.0, %v1740_v52  ;;  %v1742_v25 = vrot.slane %v1727_v48, 4  ;;  %v1318_v24 = vsel %vm601_vm0, %v1130_v29, %v1317_v43 }
 0x196   : > { %v1746_v50 = vrot.slane %v1739_v54, 4  ;;  %v1745_v60 = vsel %vm601_vm0, 0.0, %v1744_v58  ;;  %v1774_v61 = vrot.slane %v3588_v51, 4  ;;  %v1786_v9 = vrot.slane %v3591_v55, 4 }
 0x197   : > { %v1316_v41 = vsel %vm601_vm0, %v1315_v2, %v3295_v6  ;;  %v1743_v13 = vsel %vm601_vm0, 0.0, %v1742_v25  ;;  %v1916_v15 = vsel %vm601_vm0, %v1742_v25, %v1723_v23  ;;  %v3612_v6 = vperm.slane %v1318_v24, %v3322_v17  ;;  %v1128_v23 = vpop.permute.xlu1 %1127 }
 0x198   : > { %v1747_v62 = vsel %vm601_vm0, 0.0, %v1746_v50  ;;  %v1927_v49 = vsel %vm601_vm0, %v1746_v50, %v1735_v18  ;;  %v1920_v43 = vperm.slane %v1916_v15, %v3322_v17  ;;  %v1921_v16 = vrot.slane %v1743_v13, 4 }
 0x199   : > { %v1931_v21 = vperm.slane %v1927_v49, %v3322_v17  ;;  %v1932_v11 = vrot.slane %v1747_v62, 4  ;;  %v3609_v8 = vperm.slane %v1316_v41, %v3322_v17  ;;  %v1203_v27 = vrot.slane %v1126_v40, 4 }
 0x19a   : > { %v1206_v29 = vsel %vm601_vm0, %v1126_v40, %v1205_v30  ;;  %v1922_v39 = vsel %vm601_vm0, %v1921_v16, %v1741_v38  ;;  %v1940_v18 = vrot.slane %v1920_v43, 4  ;;  %v1353_v52 = vrot.slane %v3612_v6, 4 }
 0x19b   : > { %v1933_v33 = vsel %vm601_vm0, %v1932_v11, %v1745_v60  ;;  %v1952_v28 = vrot.slane %v1931_v21, 4  ;;  %v1926_v31 = vperm.slane %v1922_v39, %v3322_v17  ;;  %v1341_v54 = vrot.slane %v3609_v8, 4 }
 0x19c   : > { %v1937_v48 = vperm.slane %v1933_v33, %v3322_v17  ;;  %v1204_v58 = vsel %vm601_vm0, %v1203_v27, %v3239_v63  ;;  %v1214_v30 = vperm.slane %v1206_v29, %v3322_v17  ;;  %v1259_v2 = vrot.slane %v1128_v23, 4 }
 0x19d   : > { %v1262_v38 = vsel %vm601_vm0, %v1128_v23, %v1261_v46  ;;  %v1938_v25 = vrot.slane %v1926_v31, 4  ;;  %v1941_v50 = vsel %vm601_vm0, %v1926_v31, %v1940_v18  ;;  %v1210_v13 = vperm.slane %v1204_v58, %v3322_v17  ;;  %v3659_v58 = vpop.permute.xlu2 %1117 }
 0x19e   : > { %v1950_v24 = vrot.slane %v1937_v48, 4  ;;  %v1953_v60 = vsel %vm601_vm0, %v1937_v48, %v1952_v28  ;;  %v1949_v41 = vperm.slane %v1941_v50, %v3337_v36  ;;  %v1240_v63 = vsel %vm601_vm0, %v1239_v14, %v1214_v30 }
 0x19f   : > { %v1961_v40 = vperm.slane %v1953_v60, %v3337_v36  ;;  %v1939_v62 = vsel %vm601_vm0, %v1938_v25, %v1920_v43  ;;  %v1241_v15 = vrot.slane %v1214_v30, 4  ;;  %v1246_v49 = vperm.slane %v1240_v63, %v3337_v36  ;;  %v581_v30 = vpop.permute.xlu0 %580 }
 0x1a0   : > { %v1951_v46 = vsel %vm601_vm0, %v1950_v24, %v1931_v21  ;;  %v1945_v16 = vperm.slane %v1939_v62, %v3337_v36  ;;  %v1968_v29 = vrot.slane %v1949_v41, 4  ;;  %v1228_v23 = vsel %vm601_vm0, %v1227_v10, %v1210_v13 }
 0x1a1   : > { %v1957_v11 = vperm.slane %v1951_v46, %v3337_v36  ;;  %v1966_v27 = vrot.slane %v1961_v40, 4  ;;  %v1229_v39 = vrot.slane %v1210_v13, 4  ;;  %v1242_v14 = vsel %vm601_vm0, %v3459_v32, %v1241_v15 }
 0x1a2   : > { %v1255_v43 = vrot.slane %v1246_v49, 4  ;;  %v1964_v21 = vrot.slane %v1945_v16, 4  ;;  %v1969_v28 = vsel %vm601_vm0, %v1961_v40, %v1968_v29  ;;  %v1234_v32 = vperm.slane %v1228_v23, %v3337_v36 }
 0x1a3   : > { %v1962_v33 = vrot.slane %v1957_v11, 4  ;;  %v1967_v18 = vsel %vm601_vm0, %v1966_v27, %v1949_v41  ;;  %v1230_v10 = vsel %vm601_vm0, %v3453_v0, %v1229_v39  ;;  %v1250_v31 = vperm.slane %v1242_v14, %v3337_v36  ;;  %2144 = vst.msk [vmem:[%s3650_s3 + $0x60] sm:$0xff] %vm1041_vm1, %v1969_v28  ;;  %v3689_v39 = vpop.permute.xlu1 %1115 }
 0x1a4   : > { %2140 = vst.msk [vmem:[%s3650_s3 + $0x40] sm:$0xff] %vm1041_vm1, %v1967_v18  ;;  %v1256_v48 = vsel %vm601_vm0, 0.0, %v1255_v43  ;;  %v1965_v50 = vsel %vm601_vm0, %v1957_v11, %v1964_v21  ;;  %v1238_v24 = vperm.slane %v1230_v10, %v3337_v36  ;;  %v1260_v0 = vsel %vm601_vm0, %v1259_v2, %v3271_v3 }
 0x1a5   : > { %v1963_v25 = vsel %vm601_vm0, %v1962_v33, %v1945_v16  ;;  %v1251_v60 = vrot.slane %v1234_v32, 4  ;;  %v1257_v41 = vrot.slane %v1250_v31, 4  ;;  %v3671_v40 = vperm.slane %v1260_v0, %v3322_v17  ;;  %2136 = vst.msk [vmem:[%s3650_s3 + $0x20] sm:$0xff] %vm1041_vm1, %v1965_v50 }
 0x1a6   : > { %2132 = vst.msk [vmem:[%s3650_s3] sm:$0xff] %vm1041_vm1, %v1963_v25  ;;  %v3674_v13 = vperm.slane %v1262_v38, %v3322_v17  ;;  %v1253_v63 = vrot.slane %v1238_v24, 4  ;;  %v1329_v62 = vrot.slane %v3659_v58, 4  ;;  %v713_v46 = vrot.slane %v581_v30, 4 }
 0x1a7   : > { %v716_v3 = vsel %vm601_vm0, %v581_v30, %v715_v34  ;;  %v1252_v2 = vsel %vm601_vm0, 0.0, %v1251_v60  ;;  %v1258_v15 = vsel %vm601_vm0, 0.0, %v1257_v41  ;;  %v1436_v16 = vsel %vm601_vm0, %v1257_v41, %v1246_v49 }
 0x1a8   : > { %v1285_v11 = vrot.slane %v3671_v40, 4  ;;  %v1254_v38 = vsel %vm601_vm0, 0.0, %v1253_v63  ;;  %v1425_v27 = vsel %vm601_vm0, %v1253_v63, %v1234_v32  ;;  %v1440_v29 = vperm.slane %v1436_v16, %v3322_v17 }
 0x1a9   : > { %v1441_v23 = vrot.slane %v1258_v15, 4  ;;  %v1429_v14 = vperm.slane %v1425_v27, %v3322_v17  ;;  %v1430_v34 = vrot.slane %v1254_v38, 4  ;;  %v1297_v43 = vrot.slane %v3674_v13, 4 }
 0x1aa   : > { %v714_v33 = vsel %vm601_vm0, %v713_v46, %v3255_v1  ;;  %v1461_v21 = vrot.slane %v1440_v29, 4  ;;  %v724_v28 = vperm.slane %v716_v3, %v3322_v17  ;;  %v1272_v30 = vsel %vm601_vm0, %v1271_v44, %v3689_v39 }
 0x1ab   : > { %v1442_v49 = vsel %vm601_vm0, %v1441_v23, %v1256_v48  ;;  %v720_v18 = vperm.slane %v714_v33, %v3322_v17  ;;  %v1431_v10 = vsel %vm601_vm0, %v1430_v34, %v1252_v2  ;;  %v1449_v31 = vrot.slane %v1429_v14, 4 }
 0x1ac   : > { %v1446_v32 = vperm.slane %v1442_v49, %v3322_v17  ;;  %v1435_v25 = vperm.slane %v1431_v10, %v3322_v17  ;;  %v750_v50 = vsel %vm601_vm0, %v749_v37, %v724_v28  ;;  %v751_v41 = vrot.slane %v724_v28, 4 }
 0x1ad   : > { %v738_v1 = vsel %vm601_vm0, %v737_v57, %v720_v18  ;;  %v739_v48 = vrot.slane %v720_v18, 4  ;;  %v756_v23 = vperm.slane %v750_v50, %v3337_v36  ;;  %v3738_v50 = vpop.permute.xlu2 %1686 }
 0x1ae   : > { %v1459_v24 = vrot.slane %v1446_v32, 4  ;;  %v1462_v0 = vsel %vm601_vm0, %v1446_v32, %v1461_v21  ;;  %v744_v60 = vperm.slane %v738_v1, %v3337_v36  ;;  %v1447_v63 = vrot.slane %v1435_v25, 4 }
 0x1af   : > { %v1450_v44 = vsel %vm601_vm0, %v1435_v25, %v1449_v31  ;;  %v1470_v46 = vperm.slane %v1462_v0, %v3337_v36  ;;  %v740_v3 = vsel %vm601_vm0, %v3506_v20, %v739_v48  ;;  %v752_v15 = vsel %vm601_vm0, %v3511_v22, %v751_v41 }
 0x1b0   : > { %v1458_v57 = vperm.slane %v1450_v44, %v3337_v36  ;;  %v1460_v2 = vsel %vm601_vm0, %v1459_v24, %v1440_v29  ;;  %v748_v37 = vperm.slane %v740_v3, %v3337_v36  ;;  %v1448_v16 = vsel %vm601_vm0, %v1447_v63, %v1429_v14 }
 0x1b1   : > { %v1466_v38 = vperm.slane %v1460_v2, %v3337_v36  ;;  %v1475_v27 = vrot.slane %v1470_v46, 4  ;;  %v1454_v20 = vperm.slane %v1448_v16, %v3337_v36  ;;  %v760_v33 = vperm.slane %v752_v15, %v3337_v36 }
 0x1b2   : > { %v1477_v34 = vrot.slane %v1458_v57, 4  ;;  %v761_v29 = vrot.slane %v744_v60, 4  ;;  %v763_v18 = vrot.slane %v748_v37, 4  ;;  %v765_v22 = vrot.slane %v756_v23, 4 }
 0x1b3   : > { %v1471_v49 = vrot.slane %v1466_v38, 4  ;;  %v1476_v21 = vsel %vm601_vm0, %v1475_v27, %v1458_v57  ;;  %v1473_v28 = vrot.slane %v1454_v20, 4  ;;  %v767_v32 = vrot.slane %v760_v33, 4  ;;  %v3762_v33 = vpop.permute.xlu0 %1660 }
 0x1b4   : > { %v1478_v14 = vsel %vm601_vm0, %v1470_v46, %v1477_v34  ;;  %1596 = vst.msk [vmem:[%s3483_s15 + $0x48] sm:$0xff] %vm1041_vm1, %v1476_v21  ;;  %v762_v10 = vsel %vm601_vm0, 0.0, %v761_v29  ;;  %v764_v25 = vsel %vm601_vm0, 0.0, %v763_v18  ;;  %v766_v1 = vsel %vm601_vm0, 0.0, %v765_v22 }
 0x1b5   : > { %v1472_v31 = vsel %vm601_vm0, %v1471_v49, %v1454_v20  ;;  %1600 = vst.msk [vmem:[%s3483_s15 + $0x68] sm:$0xff] %vm1041_vm1, %v1478_v14  ;;  %v933_v48 = vsel %vm601_vm0, %v763_v18, %v744_v60  ;;  %v1474_v24 = vsel %vm601_vm0, %v1466_v38, %v1473_v28  ;;  %v768_v0 = vsel %vm601_vm0, 0.0, %v767_v32 }
 0x1b6   : > { %1588 = vst.msk [vmem:[%s3483_s15 + $0x8] sm:$0xff] %vm1041_vm1, %v1472_v31  ;;  %v937_v41 = vperm.slane %v933_v48, %v3322_v17  ;;  %v938_v63 = vrot.slane %v764_v25, 4  ;;  %v944_v44 = vsel %vm601_vm0, %v767_v32, %v756_v23  ;;  %v949_v46 = vrot.slane %v768_v0, 4 }
 0x1b7   : > { %1592 = vst.msk [vmem:[%s3483_s15 + $0x28] sm:$0xff] %vm1041_vm1, %v1474_v24  ;;  %v1273_v3 = vrot.slane %v3689_v39, 4  ;;  %v1278_v60 = vperm.slane %v1272_v30, %v3322_v17  ;;  %v948_v2 = vperm.slane %v944_v44, %v3322_v17  ;;  %v1872_v15 = vrot.slane %v3738_v50, 4 }
 0x1b8   : > { %v939_v57 = vsel %vm601_vm0, %v938_v63, %v762_v10  ;;  %v957_v37 = vrot.slane %v937_v41, 4  ;;  %v950_v38 = vsel %vm601_vm0, %v949_v46, %v766_v1 }
 0x1b9   : > { %v943_v16 = vperm.slane %v939_v57, %v3322_v17  ;;  %v1274_v27 = vsel %vm601_vm0, %v3430_v53, %v1273_v3  ;;  %v1283_v23 = vrot.slane %v1278_v60, 4  ;;  %v954_v20 = vperm.slane %v950_v38, %v3322_v17 }
 0x1ba   : > { %v969_v39 = vrot.slane %v948_v2, 4  ;;  %v1282_v30 = vperm.slane %v1274_v27, %v3322_v17  ;;  %v1286_v34 = vsel %vm601_vm0, %v1278_v60, %v1285_v11  ;;  %v571_v60 = vpop.permute.xlu1 %570 }
 0x1bb   : > { %v955_v29 = vrot.slane %v943_v16, 4  ;;  %v958_v49 = vsel %vm601_vm0, %v943_v16, %v957_v37  ;;  %v1284_v21 = vsel %vm601_vm0, %v1283_v23, %v3671_v40  ;;  %v1294_v53 = vperm.slane %v1286_v34, %v3337_v36 }
 0x1bc   : > { %v966_v18 = vperm.slane %v958_v49, %v3337_v36  ;;  %v967_v22 = vrot.slane %v954_v20, 4  ;;  %v970_v28 = vsel %vm601_vm0, %v954_v20, %v969_v39  ;;  %v1290_v14 = vperm.slane %v1284_v21, %v3337_v36 }
 0x1bd   : > { %v956_v10 = vsel %vm601_vm0, %v955_v29, %v937_v41  ;;  %v978_v11 = vperm.slane %v970_v28, %v3337_v36  ;;  %v1295_v32 = vrot.slane %v1282_v30, 4  ;;  %v1298_v31 = vsel %vm601_vm0, %v1282_v30, %v1297_v43 }
 0x1be   : > { %v962_v40 = vperm.slane %v956_v10, %v3337_v36  ;;  %v968_v25 = vsel %vm601_vm0, %v967_v22, %v948_v2  ;;  %v985_v1 = vrot.slane %v966_v18, 4  ;;  %v1306_v48 = vperm.slane %v1298_v31, %v3337_v36 }
 0x1bf   : > { %v974_v24 = vperm.slane %v968_v25, %v3337_v36  ;;  %v983_v0 = vrot.slane %v978_v11, 4  ;;  %v1296_v41 = vsel %vm601_vm0, %v1295_v32, %v3674_v13  ;;  %v1307_v63 = vrot.slane %v1290_v14, 4 }
 0x1c0   : > { %v981_v44 = vrot.slane %v962_v40, 4  ;;  %v986_v43 = vsel %vm601_vm0, %v978_v11, %v985_v1  ;;  %v1302_v46 = vperm.slane %v1296_v41, %v3337_v36  ;;  %v1309_v3 = vrot.slane %v1294_v53, 4 }
 0x1c1   : > { %v979_v57 = vrot.slane %v974_v24, 4  ;;  %v984_v2 = vsel %vm601_vm0, %v983_v0, %v966_v18  ;;  %1056 = vst.msk [vmem:[%s3412_s23 + $0x70] sm:$0xff] %vm1041_vm1, %v986_v43  ;;  %v1308_v37 = vsel %vm601_vm0, 0.0, %v1307_v63  ;;  %v1313_v16 = vrot.slane %v1306_v48, 4  ;;  %v1142_v18 = vpop.permute.xlu0 %1141 }
 0x1c2   : > { %v982_v13 = vsel %vm601_vm0, %v974_v24, %v981_v44  ;;  %1052 = vst.msk [vmem:[%s3412_s23 + $0x50] sm:$0xff] %vm1041_vm1, %v984_v2  ;;  %v1310_v38 = vsel %vm601_vm0, 0.0, %v1309_v3  ;;  %v1311_v27 = vrot.slane %v1302_v46, 4  ;;  %v1479_v23 = vsel %vm601_vm0, %v1309_v3, %v1290_v14 }
 0x1c3   : > { %v980_v20 = vsel %vm601_vm0, %v979_v57, %v962_v40  ;;  %1048 = vst.msk [vmem:[%s3412_s23 + $0x30] sm:$0xff] %vm1041_vm1, %v982_v13  ;;  %v1314_v39 = vsel %vm601_vm0, 0.0, %v1313_v16  ;;  %v1483_v30 = vperm.slane %v1479_v23, %v3322_v17  ;;  %v1484_v34 = vrot.slane %v1310_v38, 4 }
 0x1c4   : > { %1044 = vst.msk [vmem:[%s3412_s23 + $0x10] sm:$0xff] %vm1041_vm1, %v980_v20  ;;  %v1312_v29 = vsel %vm601_vm0, 0.0, %v1311_v27  ;;  %v1490_v49 = vsel %vm601_vm0, %v1313_v16, %v1302_v46  ;;  %v1495_v21 = vrot.slane %v1314_v39, 4  ;;  %v1818_v53 = vrot.slane %v3762_v33, 4 }
 0x1c5   : > { %v1485_v22 = vsel %vm601_vm0, %v1484_v34, %v1308_v37  ;;  %v1494_v28 = vperm.slane %v1490_v49, %v3322_v17  ;;  %v1503_v14 = vrot.slane %v1483_v30, 4  ;;  %v782_v10 = vsel %vm601_vm0, %v781_v45, %v571_v60 }
 0x1c6   : > { %v1489_v11 = vperm.slane %v1485_v22, %v3322_v17  ;;  %v1496_v32 = vsel %vm601_vm0, %v1495_v21, %v1312_v29  ;;  %v783_v31 = vrot.slane %v571_v60, 4  ;;  %v3811_v40 = vperm.slane %v782_v10, %v3322_v17 }
 0x1c7   : > { %v1500_v25 = vperm.slane %v1496_v32, %v3322_v17  ;;  %v1515_v1 = vrot.slane %v1494_v28, 4  ;;  %v1327_v48 = vrot.slane %v1142_v18, 4  ;;  %v1330_v24 = vsel %vm601_vm0, %v1142_v18, %v1329_v62 }
 0x1c8   : > { %v1501_v0 = vrot.slane %v1489_v11, 4  ;;  %v1504_v41 = vsel %vm601_vm0, %v1489_v11, %v1503_v14  ;;  %v784_v45 = vsel %vm601_vm0, %v3464_v56, %v783_v31  ;;  %v793_v63 = vrot.slane %v3811_v40, 4  ;;  %v583_v56 = vpop.permute.xlu1 %582 }
 0x1c9   : > { %v1512_v44 = vperm.slane %v1504_v41, %v3337_v36  ;;  %v1513_v43 = vrot.slane %v1500_v25, 4  ;;  %v1516_v46 = vsel %vm601_vm0, %v1500_v25, %v1515_v1  ;;  %v3824_v3 = vperm.slane %v784_v45, %v3322_v17  ;;  %v3853_v11 = vpop.permute.xlu0 %1674 }
 0x1ca   : > { %v1502_v60 = vsel %vm601_vm0, %v1501_v0, %v1483_v30  ;;  %v1524_v62 = vperm.slane %v1516_v46, %v3337_v36  ;;  %v1328_v57 = vsel %vm601_vm0, %v1327_v48, %v3659_v58  ;;  %v1338_v2 = vperm.slane %v1330_v24, %v3322_v17 }
 0x1cb   : > { %v1508_v37 = vperm.slane %v1502_v60, %v3337_v36  ;;  %v1514_v16 = vsel %vm601_vm0, %v1513_v43, %v1494_v28  ;;  %v1531_v13 = vrot.slane %v1512_v44, 4  ;;  %v805_v38 = vrot.slane %v3824_v3, 4 }
 0x1cc   : > { %v1520_v27 = vperm.slane %v1514_v16, %v3337_v36  ;;  %v1529_v23 = vrot.slane %v1524_v62, 4  ;;  %v1334_v20 = vperm.slane %v1328_v57, %v3322_v17  ;;  %v1351_v39 = vrot.slane %v1338_v2, 4 }
 0x1cd   : > { %v1527_v30 = vrot.slane %v1508_v37, 4  ;;  %v1532_v58 = vsel %vm601_vm0, %v1524_v62, %v1531_v13  ;;  %v1354_v34 = vsel %vm601_vm0, %v1338_v2, %v1353_v52  ;;  %v769_v29 = vrot.slane %v583_v56, 4 }
 0x1ce   : > { %v1525_v49 = vrot.slane %v1520_v27, 4  ;;  %v1530_v21 = vsel %vm601_vm0, %v1529_v23, %v1512_v44  ;;  %1601 = vst.msk [vmem:[%s3483_s15 + $0x70] sm:$0xff] %vm1041_vm1, %v1532_v58  ;;  %v1339_v18 = vrot.slane %v1334_v20, 4  ;;  %v1342_v22 = vsel %vm601_vm0, %v1334_v20, %v1341_v54 }
 0x1cf   : > { %v1528_v28 = vsel %vm601_vm0, %v1520_v27, %v1527_v30  ;;  %1597 = vst.msk [vmem:[%s3483_s15 + $0x50] sm:$0xff] %vm1041_vm1, %v1530_v21  ;;  %v1350_v14 = vperm.slane %v1342_v22, %v3337_v36  ;;  %v1352_v52 = vsel %vm601_vm0, %v1351_v39, %v3612_v6  ;;  %v1362_v10 = vperm.slane %v1354_v34, %v3337_v36 }
 0x1d0   : > { %v1526_v32 = vsel %vm601_vm0, %v1525_v49, %v1508_v37  ;;  %1593 = vst.msk [vmem:[%s3483_s15 + $0x30] sm:$0xff] %vm1041_vm1, %v1528_v28  ;;  %v1340_v54 = vsel %vm601_vm0, %v1339_v18, %v3609_v8  ;;  %v1358_v31 = vperm.slane %v1352_v52, %v3337_v36  ;;  %v770_v25 = vsel %vm601_vm0, %v769_v29, %v3279_v4 }
 0x1d1   : > { %1589 = vst.msk [vmem:[%s3483_s15 + $0x10] sm:$0xff] %vm1041_vm1, %v1526_v32  ;;  %v1346_v6 = vperm.slane %v1340_v54, %v3337_v36  ;;  %v1365_v1 = vrot.slane %v1350_v14, 4  ;;  %v1369_v48 = vrot.slane %v1362_v10, 4  ;;  %v772_v24 = vsel %vm601_vm0, %v583_v56, %v771_v35 }
 0x1d2   : > { %v1367_v0 = vrot.slane %v1358_v31, 4  ;;  %v776_v41 = vperm.slane %v770_v25, %v3322_v17  ;;  %v780_v8 = vperm.slane %v772_v24, %v3322_v17  ;;  %v1860_v45 = vrot.slane %v3853_v11, 4 }
 0x1d3   : > { %v1363_v44 = vrot.slane %v1346_v6, 4  ;;  %v1366_v43 = vsel %vm601_vm0, 0.0, %v1365_v1  ;;  %v1370_v46 = vsel %vm601_vm0, 0.0, %v1369_v48  ;;  %v1533_v60 = vsel %vm601_vm0, %v1365_v1, %v1346_v6 }
 0x1d4   : > { %v1368_v62 = vsel %vm601_vm0, 0.0, %v1367_v0  ;;  %v1537_v4 = vperm.slane %v1533_v60, %v3322_v17  ;;  %v1538_v35 = vrot.slane %v1366_v43, 4  ;;  %v1544_v57 = vsel %vm601_vm0, %v1369_v48, %v1358_v31 }
 0x1d5   : > { %v1364_v2 = vsel %vm601_vm0, 0.0, %v1363_v44  ;;  %v1548_v56 = vperm.slane %v1544_v57, %v3322_v17  ;;  %v1549_v37 = vrot.slane %v1370_v46, 4  ;;  %v794_v16 = vsel %vm601_vm0, %v793_v63, %v776_v41 }
 0x1d6   : > { %v1539_v13 = vsel %vm601_vm0, %v1538_v35, %v1364_v2  ;;  %v1557_v27 = vrot.slane %v1537_v4, 4  ;;  %v795_v23 = vrot.slane %v776_v41, 4  ;;  %v800_v20 = vperm.slane %v794_v16, %v3337_v36 }
 0x1d7   : > { %v1543_v39 = vperm.slane %v1539_v13, %v3322_v17  ;;  %v1550_v30 = vsel %vm601_vm0, %v1549_v37, %v1368_v62  ;;  %v1569_v58 = vrot.slane %v1548_v56, 4  ;;  %v806_v34 = vsel %vm601_vm0, %v805_v38, %v780_v8 }
 0x1d8   : > { %v1554_v29 = vperm.slane %v1550_v30, %v3322_v17  ;;  %v796_v63 = vsel %vm601_vm0, %v3811_v40, %v795_v23  ;;  %v807_v49 = vrot.slane %v780_v8, 4  ;;  %v812_v21 = vperm.slane %v806_v34, %v3337_v36 }
 0x1d9   : > { %v1555_v18 = vrot.slane %v1543_v39, 4  ;;  %v1558_v22 = vsel %vm601_vm0, %v1543_v39, %v1557_v27  ;;  %v804_v28 = vperm.slane %v796_v63, %v3337_v36  ;;  %v817_v14 = vrot.slane %v800_v20, 4  ;;  %v1663_v39 = vpop.permute.xlu1 %1662 }
 0x1da   : > { %v1566_v52 = vperm.slane %v1558_v22, %v3337_v36  ;;  %v1567_v38 = vrot.slane %v1554_v29, 4  ;;  %v1570_v10 = vsel %vm601_vm0, %v1554_v29, %v1569_v58  ;;  %v808_v32 = vsel %vm601_vm0, %v3824_v3, %v807_v49 }
 0x1db   : > { %v1556_v40 = vsel %vm601_vm0, %v1555_v18, %v1537_v4  ;;  %v1578_v54 = vperm.slane %v1570_v10, %v3337_v36  ;;  %v816_v31 = vperm.slane %v808_v32, %v3337_v36  ;;  %v818_v25 = vsel %vm601_vm0, 0.0, %v817_v14 }
 0x1dc   : > { %v1562_v6 = vperm.slane %v1556_v40, %v3337_v36  ;;  %v1568_v1 = vsel %vm601_vm0, %v1567_v38, %v1548_v56  ;;  %v1585_v48 = vrot.slane %v1566_v52, 4  ;;  %v819_v24 = vrot.slane %v804_v28, 4 }
 0x1dd   : > { %v1574_v3 = vperm.slane %v1568_v1, %v3337_v36  ;;  %v1583_v0 = vrot.slane %v1578_v54, 4  ;;  %v821_v41 = vrot.slane %v812_v21, 4  ;;  %v823_v8 = vrot.slane %v816_v31, 4 }
 0x1de   : > { %v1581_v44 = vrot.slane %v1562_v6, 4  ;;  %v1586_v43 = vsel %vm601_vm0, %v1578_v54, %v1585_v48  ;;  %v820_v46 = vsel %vm601_vm0, 0.0, %v819_v24  ;;  %v987_v60 = vsel %vm601_vm0, %v819_v24, %v800_v20 }
 0x1df   : > { %v1579_v62 = vrot.slane %v1574_v3, 4  ;;  %v1584_v4 = vsel %vm601_vm0, %v1583_v0, %v1566_v52  ;;  %1602 = vst.msk [vmem:[%s3483_s15 + $0x78] sm:$0xff] %vm1041_vm1, %v1586_v43  ;;  %v822_v35 = vsel %vm601_vm0, 0.0, %v821_v41  ;;  %v824_v57 = vsel %vm601_vm0, 0.0, %v823_v8 }
 0x1e0   : > { %v1582_v2 = vsel %vm601_vm0, %v1574_v3, %v1581_v44  ;;  %1598 = vst.msk [vmem:[%s3483_s15 + $0x58] sm:$0xff] %vm1041_vm1, %v1584_v4  ;;  %v991_v56 = vperm.slane %v987_v60, %v3322_v17  ;;  %v992_v37 = vrot.slane %v820_v46, 4  ;;  %v998_v16 = vsel %vm601_vm0, %v823_v8, %v812_v21 }
 0x1e1   : > { %v1580_v13 = vsel %vm601_vm0, %v1579_v62, %v1562_v6  ;;  %1594 = vst.msk [vmem:[%s3483_s15 + $0x38] sm:$0xff] %vm1041_vm1, %v1582_v2  ;;  %v1002_v27 = vperm.slane %v998_v16, %v3322_v17  ;;  %v1003_v23 = vrot.slane %v824_v57, 4  ;;  %v1861_v20 = vsel %vm601_vm0, %v1860_v45, %v3303_v7 }
 0x1e2   : > { %1590 = vst.msk [vmem:[%s3483_s15 + $0x18] sm:$0xff] %vm1041_vm1, %v1580_v13  ;;  %v993_v30 = vsel %vm601_vm0, %v992_v37, %v818_v25  ;;  %v1011_v58 = vrot.slane %v991_v56, 4  ;;  %v1863_v34 = vsel %vm601_vm0, %v3853_v11, %v1862_v47  ;;  %v1867_v29 = vperm.slane %v1861_v20, %v3322_v17 }
 0x1e3   : > { %v997_v63 = vperm.slane %v993_v30, %v3322_v17  ;;  %v1004_v49 = vsel %vm601_vm0, %v1003_v23, %v822_v35  ;;  %v1023_v21 = vrot.slane %v1002_v27, 4  ;;  %v1871_v45 = vperm.slane %v1863_v34, %v3322_v17 }
 0x1e4   : > { %2836 = shalt.err (!%p2833_p0)
}
 0x1e5   : > { %s2975_s11 = smov 128   ;;  %s2976_s5 = smov 8   ;;  %v1008_v7 = vperm.slane %v1004_v49, %v3322_v17  ;;  %v1886_v47 = vrot.slane %v1867_v29, 4  ;;  %v1873_v11 = vsel %vm601_vm0, %v1872_v15, %v1663_v39  ;;  %v1874_v18 = vrot.slane %v1663_v39, 4  ;;  %v1683_v16 = vpop.permute.xlu0 %1682  ;;  %v1685_v13 = vpop.permute.xlu1 %1684 }
 0x1e6   : > { %2526 = dma.vmem_to_hbm [thread:$0]  (%p3104_p5), %s3926_s22, 2048, %s2195_s10, %s3950_s1, %s2975_s11, %s2975_s11, %s2976_s5   ;;  %v1009_v22 = vrot.slane %v997_v63, 4  ;;  %v1012_v28 = vsel %vm601_vm0, %v997_v63, %v1011_v58  ;;  %v1898_v14 = vrot.slane %v1871_v45, 4  ;;  %v1879_v52 = vperm.slane %v1873_v11, %v3322_v17 }
 0x1e7   : > { %v1020_v38 = vperm.slane %v1012_v28, %v3337_v36  ;;  %v1021_v10 = vrot.slane %v1008_v7, 4  ;;  %v1024_v32 = vsel %vm601_vm0, %v1008_v7, %v1023_v21  ;;  %v1875_v40 = vsel %vm601_vm0, %v3738_v50, %v1874_v18  ;;  %s2172_s24 = scalar_lea.hbm %s4227_s6, %s3887_s16  ;;  %s2173_s15 = sshll.u32 %s3412_s23, 4  ;;  %s4008_s15 = int_to_ptr.vmem [resolvable:$true] %s2173_s15 }
 0x1e8   : > { %v1010_v15 = vsel %vm601_vm0, %v1009_v22, %v991_v56  ;;  %v1032_v54 = vperm.slane %v1024_v32, %v3337_v36  ;;  %v1883_v31 = vperm.slane %v1875_v40, %v3322_v17  ;;  %v1884_v25 = vrot.slane %v1879_v52, 4  ;;  %s3995_s30 = sshll.u32 %s2172_s24, 4  ;;  %s2149_s21 = scalar_lea.sflag [#allocation4], %s3182_s4  ;;  %s2176_s30 = int_to_ptr.hbm [resolvable:$true] %s3995_s30 }
 0x1e9   : > { %v1016_v6 = vperm.slane %v1010_v15, %v3337_v36  ;;  %v1022_v1 = vsel %vm601_vm0, %v1021_v10, %v1002_v27  ;;  %v1039_v48 = vrot.slane %v1020_v38, 4  ;;  %v1887_v24 = vsel %vm601_vm0, %v1879_v52, %v1886_v47  ;;  %s2851_s27 = sshra.s32 %s2176_s30, 4  ;;  %s2857_s19 = scalar_lea.hbm %s4227_s6, 256  ;;  %s2852_s27 = int_to_ptr.hbm [resolvable:$true] %s2851_s27 }
 0x1ea   : > { %v1028_v50 = vperm.slane %v1022_v1, %v3337_v36  ;;  %v1037_v3 = vrot.slane %v1032_v54, 4  ;;  %v1885_v0 = vsel %vm601_vm0, %v1884_v25, %v1867_v29  ;;  %v1895_v41 = vperm.slane %v1887_v24, %v3337_v36  ;;  %s2853_s22 = scalar_lea.hbm %s2852_s27, 128  ;;  %p2858_p12 = scmp.lt.s32.totalorder %s2852_s27, %s4227_s6 }
 0x1eb   : > { %v1035_v8 = vrot.slane %v1016_v6, 4  ;;  %v1040_v44 = vsel %vm601_vm0, %v1032_v54, %v1039_v48  ;;  %v1891_v43 = vperm.slane %v1885_v0, %v3337_v36  ;;  %v1896_v46 = vrot.slane %v1883_v31, 4  ;;  %p2854_p3 = scmp.ne.s32.totalorder %s2852_s27, %s2853_s22  ;;  %p2859_p1 = scmp.lt.s32.totalorder %s2857_s19, %s2853_s22 }
 0x1ec   : > { %v1033_v60 = vrot.slane %v1028_v50, 4  ;;  %v1038_v62 = vsel %vm601_vm0, %v1037_v3, %v1020_v38  ;;  %1057 = vst.msk [vmem:[%s3412_s23 + $0x78] sm:$0xff] %vm1041_vm1, %v1040_v44  ;;  %v1899_v4 = vsel %vm601_vm0, %v1883_v31, %v1898_v14  ;;  %v1910_v35 = vrot.slane %v1895_v41, 4 }
 0x1ed   : > { %v1036_v57 = vsel %vm601_vm0, %v1028_v50, %v1035_v8  ;;  %1053 = vst.msk [vmem:[%s3412_s23 + $0x58] sm:$0xff] %vm1041_vm1, %v1038_v62  ;;  %v1897_v2 = vsel %vm601_vm0, %v1896_v46, %v1871_v45  ;;  %v1907_v56 = vperm.slane %v1899_v4, %v3337_v36  ;;  %v1908_v37 = vrot.slane %v1891_v43, 4  ;;  %p2855_p7 = pnand %p2854_p3, %p3104_p5  ;;  %p2860_p2 = por %p2859_p1, %p2858_p12 }
 0x1ee   : > { %v1034_v27 = vsel %vm601_vm0, %v1033_v60, %v1016_v6  ;;  %1049 = vst.msk [vmem:[%s3412_s23 + $0x38] sm:$0xff] %vm1041_vm1, %v1036_v57  ;;  %v1903_v23 = vperm.slane %v1897_v2, %v3337_v36  ;;  %v1911_v20 = vsel %vm601_vm0, 0.0, %v1910_v35  ;;  %v2078_v39 = vsel %vm601_vm0, %v1910_v35, %v1891_v43 }
 0x1ef   : > { %1045 = vst.msk [vmem:[%s3412_s23 + $0x18] sm:$0xff] %vm1041_vm1, %v1034_v27  ;;  %v1909_v30 = vsel %vm601_vm0, 0.0, %v1908_v37  ;;  %v1914_v58 = vrot.slane %v1907_v56, 4  ;;  %v2082_v34 = vperm.slane %v2078_v39, %v3322_v17  ;;  %v2083_v29 = vrot.slane %v1911_v20, 4  ;;  %p2856_p9 = pneg %p2855_p7 }
 0x1f0   : > { %v1912_v63 = vrot.slane %v1903_v23, 4  ;;  %v1760_v49 = vrot.slane %v1683_v16, 4  ;;  %v1763_v21 = vsel %vm601_vm0, %v1683_v16, %v1762_v42  ;;  %v1816_v45 = vrot.slane %v1685_v13, 4 }
 0x1f1   : > { %p2861_p4 = pnand %p2860_p2, %p2856_p9 }
 0x1f3   : > { %2864 = shalt.err (!%p2861_p4)
}
 0x1f4   : > { %2525 = dma.vmem_to_hbm [thread:$0]  (%p3104_p5), %s4008_s15, 2048, %s2176_s30, %s2149_s21, %s2975_s11, %s2975_s11, %s2976_s5   ;;  %v1915_v42 = vsel %vm601_vm0, 0.0, %v1914_v58  ;;  %v2084_v7 = vsel %vm601_vm0, %v2083_v29, %v1909_v30  ;;  %v2089_v47 = vsel %vm601_vm0, %v1914_v58, %v1903_v23  ;;  %v2102_v11 = vrot.slane %v2082_v34, 4 }
 0x1f5   : > { %v1913_v18 = vsel %vm601_vm0, 0.0, %v1912_v63  ;;  %v2088_v22 = vperm.slane %v2084_v7, %v3322_v17  ;;  %v2093_v28 = vperm.slane %v2089_v47, %v3322_v17  ;;  %v2094_v14 = vrot.slane %v1915_v42, 4  ;;  %s2210_s12 = scalar_lea.hbm %s4229_s8, %s3887_s16  ;;  %s2211_s16 = sshll.u32 %s3650_s3, 4  ;;  %s2212_s16 = int_to_ptr.vmem [resolvable:$true] %s2211_s16 }
 0x1f6   : > { %v1761_v52 = vsel %vm601_vm0, %v1760_v49, %v3396_v59  ;;  %v1771_v38 = vperm.slane %v1763_v21, %v3322_v17  ;;  %v1817_v10 = vsel %vm601_vm0, %v1816_v45, %v3762_v33  ;;  %v1819_v32 = vsel %vm601_vm0, %v1685_v13, %v1818_v53  ;;  %s4167_s18 = sshll.u32 %s2210_s12, 4  ;;  %s2885_s15 = scalar_lea.hbm %s4229_s8, 256  ;;  %s2214_s18 = int_to_ptr.hbm [resolvable:$true] %s4167_s18 }
 0x1f7   : > { %v2095_v40 = vsel %vm601_vm0, %v2094_v14, %v1913_v18  ;;  %v2100_v15 = vrot.slane %v2088_v22, 4  ;;  %v2103_v54 = vsel %vm601_vm0, %v2088_v22, %v2102_v11  ;;  %v2114_v31 = vrot.slane %v2093_v28, 4  ;;  %s2879_s13 = sshra.s32 %s2214_s18, 4  ;;  %s2880_s13 = int_to_ptr.hbm [resolvable:$true] %s2879_s13 }
 0x1f8   : > { %v2099_v25 = vperm.slane %v2095_v40, %v3322_v17  ;;  %v2111_v6 = vperm.slane %v2103_v54, %v3337_v36  ;;  %v1767_v59 = vperm.slane %v1761_v52, %v3322_v17  ;;  %v1784_v1 = vrot.slane %v1771_v38, 4  ;;  %s2881_s20 = scalar_lea.hbm %s2880_s13, 128  ;;  %p2886_p0 = scmp.lt.s32.totalorder %s2880_s13, %s4229_s8 }
 0x1f9   : > { %v2101_v48 = vsel %vm601_vm0, %v2100_v15, %v2082_v34  ;;  %v1787_v33 = vsel %vm601_vm0, %v1771_v38, %v1786_v9  ;;  %v1823_v53 = vperm.slane %v1817_v10, %v3322_v17  ;;  %v1827_v24 = vperm.slane %v1819_v32, %v3322_v17  ;;  %p2882_p8 = scmp.ne.s32.totalorder %s2880_s13, %s2881_s20  ;;  %p2887_p3 = scmp.lt.s32.totalorder %s2885_s15, %s2881_s20 }
 0x1fa   : > { %v2107_v50 = vperm.slane %v2101_v48, %v3337_v36  ;;  %v2112_v3 = vrot.slane %v2099_v25, 4  ;;  %v2115_v0 = vsel %vm601_vm0, %v2099_v25, %v2114_v31  ;;  %v2130_v41 = vrot.slane %v2111_v6, 4 }
 0x1fb   : > { %v2123_v8 = vperm.slane %v2115_v0, %v3337_v36  ;;  %v1772_v44 = vrot.slane %v1767_v59, 4  ;;  %v1775_v43 = vsel %vm601_vm0, %v1767_v59, %v1774_v61  ;;  %v1785_v9 = vsel %vm601_vm0, %v1784_v1, %v3591_v55  ;;  %p2883_p10 = pnand %p2882_p8, %p3104_p5  ;;  %p2888_p7 = por %p2887_p3, %p2886_p0 }
 0x1fc   : > { %v2113_v46 = vsel %vm601_vm0, %v2112_v3, %v2093_v28  ;;  %v2126_v60 = vrot.slane %v2107_v50, 4  ;;  %v1783_v62 = vperm.slane %v1775_v43, %v3337_v36  ;;  %v1791_v4 = vperm.slane %v1785_v9, %v3337_v36 }
 0x1fd   : > { %v2119_v35 = vperm.slane %v2113_v46, %v3337_v36  ;;  %v2128_v57 = vrot.slane %v2123_v8, 4  ;;  %v2131_v2 = vsel %vm601_vm0, %v2123_v8, %v2130_v41  ;;  %v1773_v56 = vsel %vm601_vm0, %v1772_v44, %v3588_v51  ;;  %p2884_p13 = pneg %p2883_p10 }
 0x1fe   : > { %2147 = vst.msk [vmem:[%s3650_s3 + $0x78] sm:$0xff] %vm1041_vm1, %v2131_v2  ;;  %v1779_v55 = vperm.slane %v1773_v56, %v3337_v36  ;;  %v1795_v61 = vperm.slane %v1787_v33, %v3337_v36  ;;  %v1798_v37 = vrot.slane %v1783_v62, 4  ;;  %v1800_v16 = vrot.slane %v1791_v4, 4 }
 0x1ff   : > { %v2124_v13 = vrot.slane %v2119_v35, 4  ;;  %v2127_v27 = vsel %vm601_vm0, %v2119_v35, %v2126_v60  ;;  %v2129_v23 = vsel %vm601_vm0, %v2128_v57, %v2111_v6  ;;  %v1828_v20 = vrot.slane %v1823_v53, 4  ;;  %p2889_p9 = pnand %p2888_p7, %p2884_p13 }
 0x200   : > { %2139 = vst.msk [vmem:[%s3650_s3 + $0x38] sm:$0xff] %vm1041_vm1, %v2127_v27  ;;  %v1796_v39 = vrot.slane %v1779_v55, 4  ;;  %v1799_v51 = vsel %vm601_vm0, 0.0, %v1798_v37  ;;  %v1801_v30 = vsel %vm601_vm0, 0.0, %v1800_v16  ;;  %v1802_v58 = vrot.slane %v1795_v61, 4 }
 0x201   : > { %v2125_v34 = vsel %vm601_vm0, %v2124_v13, %v2107_v50  ;;  %2143 = vst.msk [vmem:[%s3650_s3 + $0x58] sm:$0xff] %vm1041_vm1, %v2129_v23  ;;  %v1970_v29 = vsel %vm601_vm0, %v1798_v37, %v1779_v55  ;;  %v1975_v63 = vrot.slane %v1799_v51, 4  ;;  %v1829_v49 = vsel %vm601_vm0, %v1828_v20, %v3536_v19 }
 0x202   : > { %2135 = vst.msk [vmem:[%s3650_s3 + $0x18] sm:$0xff] %vm1041_vm1, %v2125_v34  ;;  %v1797_v21 = vsel %vm601_vm0, 0.0, %v1796_v39  ;;  %v1803_v45 = vsel %vm601_vm0, 0.0, %v1802_v58  ;;  %v1974_v42 = vperm.slane %v1970_v29, %v3322_v17  ;;  %v1981_v7 = vsel %vm601_vm0, %v1802_v58, %v1791_v4 }
 0x203   : > { %v1976_v47 = vsel %vm601_vm0, %v1975_v63, %v1797_v21  ;;  %v1985_v11 = vperm.slane %v1981_v7, %v3322_v17  ;;  %v1986_v18 = vrot.slane %v1803_v45, 4  ;;  %v1831_v22 = vsel %vm601_vm0, %v1823_v53, %v1830_v5 }
 0x204   : > { %v1980_v28 = vperm.slane %v1976_v47, %v3322_v17  ;;  %v1994_v14 = vrot.slane %v1974_v42, 4  ;;  %v1835_v52 = vperm.slane %v1829_v49, %v3337_v36  ;;  %v1839_v38 = vperm.slane %v1831_v22, %v3337_v36 }
 0x205   : > { %v1987_v10 = vsel %vm601_vm0, %v1986_v18, %v1801_v30  ;;  %v2006_v32 = vrot.slane %v1985_v11, 4  ;;  %v1840_v40 = vrot.slane %v1827_v24, 4  ;;  %v1843_v15 = vsel %vm601_vm0, %v1827_v24, %v1842_v26 }
 0x206   : > { %v1991_v54 = vperm.slane %v1987_v10, %v3322_v17  ;;  %v1992_v19 = vrot.slane %v1980_v28, 4  ;;  %v1995_v5 = vsel %vm601_vm0, %v1980_v28, %v1994_v14  ;;  %v1851_v31 = vperm.slane %v1843_v15, %v3337_v36 }
 0x207   : > { %v2003_v25 = vperm.slane %v1995_v5, %v3337_v36  ;;  %v1841_v6 = vsel %vm601_vm0, %v1840_v40, %v3532_v12  ;;  %v1852_v59 = vrot.slane %v1835_v52, 4  ;;  %v1854_v1 = vrot.slane %v1839_v38, 4 }
 0x208   : > { %v1993_v48 = vsel %vm601_vm0, %v1992_v19, %v1974_v42  ;;  %v2004_v33 = vrot.slane %v1991_v54, 4  ;;  %v2007_v26 = vsel %vm601_vm0, %v1991_v54, %v2006_v32  ;;  %v1847_v53 = vperm.slane %v1841_v6, %v3337_v36 }
 0x209   : > { %v1999_v24 = vperm.slane %v1993_v48, %v3337_v36  ;;  %v2015_v50 = vperm.slane %v2007_v26, %v3337_v36  ;;  %v2022_v3 = vrot.slane %v2003_v25, 4  ;;  %v1853_v0 = vsel %vm601_vm0, 0.0, %v1852_v59 }
 0x20a   : > { %v2005_v41 = vsel %vm601_vm0, %v2004_v33, %v1985_v11  ;;  %v1855_v12 = vsel %vm601_vm0, 0.0, %v1854_v1  ;;  %v1856_v8 = vrot.slane %v1847_v53, 4  ;;  %v1858_v44 = vrot.slane %v1851_v31, 4 }
 0x20b   : > { %v2011_v43 = vperm.slane %v2005_v41, %v3337_v36  ;;  %v2018_v9 = vrot.slane %v1999_v24, 4  ;;  %v2020_v46 = vrot.slane %v2015_v50, 4  ;;  %v2023_v60 = vsel %vm601_vm0, %v2015_v50, %v2022_v3 }
 0x20c   : > { %2145 = vst.msk [vmem:[%s3650_s3 + $0x68] sm:$0xff] %vm1041_vm1, %v2023_v60  ;;  %v1857_v62 = vsel %vm601_vm0, 0.0, %v1856_v8  ;;  %v1859_v4 = vsel %vm601_vm0, 0.0, %v1858_v44  ;;  %v2024_v35 = vsel %vm601_vm0, %v1854_v1, %v1835_v52  ;;  %v2029_v57 = vrot.slane %v1855_v12, 4 }
 0x20d   : > { %v2016_v2 = vrot.slane %v2011_v43, 4  ;;  %v2019_v56 = vsel %vm601_vm0, %v2011_v43, %v2018_v9  ;;  %v2021_v55 = vsel %vm601_vm0, %v2020_v46, %v2003_v25  ;;  %v2028_v61 = vperm.slane %v2024_v35, %v3322_v17 }
 0x20e   : > { %2137 = vst.msk [vmem:[%s3650_s3 + $0x28] sm:$0xff] %vm1041_vm1, %v2019_v56  ;;  %v2030_v37 = vsel %vm601_vm0, %v2029_v57, %v1853_v0  ;;  %v2035_v16 = vsel %vm601_vm0, %v1858_v44, %v1847_v53  ;;  %v2040_v13 = vrot.slane %v1859_v4, 4 }
 0x20f   : > { %v2017_v27 = vsel %vm601_vm0, %v2016_v2, %v1999_v24  ;;  %2141 = vst.msk [vmem:[%s3650_s3 + $0x48] sm:$0xff] %vm1041_vm1, %v2021_v55  ;;  %v2034_v23 = vperm.slane %v2030_v37, %v3322_v17  ;;  %v2039_v20 = vperm.slane %v2035_v16, %v3322_v17  ;;  %v2048_v39 = vrot.slane %v2028_v61, 4 }
 0x210   : > { %2133 = vst.msk [vmem:[%s3650_s3 + $0x8] sm:$0xff] %vm1041_vm1, %v2017_v27  ;;  %v2041_v51 = vsel %vm601_vm0, %v2040_v13, %v1857_v62 }
 0x211   : > { %v2045_v30 = vperm.slane %v2041_v51, %v3322_v17  ;;  %v2046_v58 = vrot.slane %v2034_v23, 4  ;;  %v2049_v34 = vsel %vm601_vm0, %v2034_v23, %v2048_v39  ;;  %v2060_v29 = vrot.slane %v2039_v20, 4 }
 0x212   : > { %v2057_v63 = vperm.slane %v2049_v34, %v3337_v36 }
 0x213   : > { %v2047_v49 = vsel %vm601_vm0, %v2046_v58, %v2028_v61  ;;  %v2058_v21 = vrot.slane %v2045_v30, 4  ;;  %v2061_v45 = vsel %vm601_vm0, %v2045_v30, %v2060_v29 }
 0x214   : > { %v2053_v17 = vperm.slane %v2047_v49, %v3337_v36  ;;  %v2069_v42 = vperm.slane %v2061_v45, %v3337_v36  ;;  %v2076_v7 = vrot.slane %v2057_v63, 4 }
 0x215   : > { %v2059_v47 = vsel %vm601_vm0, %v2058_v21, %v2039_v20 }
 0x216   : > { %v2065_v11 = vperm.slane %v2059_v47, %v3337_v36  ;;  %v2072_v18 = vrot.slane %v2053_v17, 4  ;;  %v2074_v22 = vrot.slane %v2069_v42, 4  ;;  %v2077_v28 = vsel %vm601_vm0, %v2069_v42, %v2076_v7 }
 0x217   : > { %2146 = vst.msk [vmem:[%s3650_s3 + $0x70] sm:$0xff] %vm1041_vm1, %v2077_v28 }
 0x218   : > { %v2070_v14 = vrot.slane %v2065_v11, 4  ;;  %v2073_v52 = vsel %vm601_vm0, %v2065_v11, %v2072_v18  ;;  %v2075_v38 = vsel %vm601_vm0, %v2074_v22, %v2057_v63 }
 0x219   : > { %2138 = vst.msk [vmem:[%s3650_s3 + $0x30] sm:$0xff] %vm1041_vm1, %v2073_v52 }
 0x21a   : > { %v2071_v36 = vsel %vm601_vm0, %v2070_v14, %v2053_v17  ;;  %2142 = vst.msk [vmem:[%s3650_s3 + $0x50] sm:$0xff] %vm1041_vm1, %v2075_v38 }
 0x21b   : > { %2134 = vst.msk [vmem:[%s3650_s3 + $0x10] sm:$0xff] %vm1041_vm1, %v2071_v36 }
 0x21c   : > { %2892 = shalt.err (!%p2889_p9)
}
 0x21d   : > { %2527 = dma.vmem_to_hbm [thread:$0]  (%p3104_p5), %s2212_s16, 2048, %s2214_s18, %s3950_s1, %s2975_s11, %s2975_s11, %s2976_s5  }
 0x21e PF: > { %s4265_s3 = sld [smem:[#allocation23_spill]]  ;;  %p2552_p12 = pnand %p2454_p11, %p3069_p6 }
 0x21f   : > { %s4267_s22 = sld [smem:[#allocation25_spill]] }
 0x220   : > { %p2553_p1 = pneg %p2552_p12 }
 0x224   : > { %s2228_s23 = sand.u32 1, %s4265_s3  }
 0x225   : > { %s2229_s10 = scalar_lea.sflag [#allocation4], %s2228_s23 }
 0x226   : > { %2934 = dma.done.wait (%p2553_p1), %s2229_s10, 2048  }
 0x227   : > { %2936 = vsyncadd (%p2553_p1), %s2229_s10, 4294965248  ;;  %s4268_s19 = sadd.s32 4294967294, %s4267_s22  }
 0x228   : > { %s2238_s26 = sand.u32 1, %s4268_s19  }
 0x229   : > { %s2239_s17 = scalar_lea.sflag [#allocation15], %s2238_s26 }
 0x22a   : > { %2938 = dma.done.wait (%p2553_p1), %s2239_s17, 4096  }
 0x22b   : > { %2940 = vsyncadd (%p2553_p1), %s2239_s17, 4294963200  ;;  %s33_s10 = sadd.s32 1, %s4267_s22   ;;  %s4269_s1 = sld [smem:[#allocation28_spill]] }
 0x22c   : > { %p30_p5 = scmp.ge.s32.totalorder %s33_s10, 4   ;;  %s4270_s30 = sld [smem:[#allocation24_spill]] }
 0x22d   : > { %s4271_s9 = sld [smem:[#allocation27_spill]]  ;;  %s4272_s27 = smov %s2947_s28 }
 0x22e   : > { %s4273_s28 = smov %s2951_s29  ;;  %32 = sbr.rel (!%p30_p5) target bundleno = 17 (0x11), region = 157 }
 0x231   : > { %s4274_s29 = smov %s4269_s1 }
 0x233   :  { %2255 = vsyncpa [#allocation3], 1 }
 0x234   :  { %2257 = vsyncpa [#allocation3 + $0x1], 1 }
 0x235   :  { %2258 = vsyncpa [#allocation6], 1 }
 0x236   :  { %2260 = vsyncpa [#allocation6 + $0x1], 1 }
 0x237   :  { %2261 = vsyncpa [#allocation9], 1 }
 0x238   :  { %2262 = vsyncpa [#allocation12], 1 }
 0x239   :  { %2263 = vsyncpa [#allocation4], 1 }
 0x23a   :  { %2265 = vsyncpa [#allocation4 + $0x1], 1 }
 0x23b   :  { %2266 = vsyncpa [#allocation15], 1 }
 0x23c   :  { %2268 = vsyncpa [#allocation15 + $0x1], 1 }

</bundles_post_ra>
